<compile_context>
chip_gen: v6e
topology: v6e:2x2x1
jax: 0.10.0
libtpu: 0.0.40
codegen_flags: <defaults>
</compile_context>

<pallas_src>
import functools

import jax
import jax.numpy as jnp
from jax import lax
from jax.experimental import pallas as pl
from jax.experimental.pallas import tpu as pltpu

# Small demo shapes consistent with the module's forward.
B = 4            # batch
N = 51           # raw sequence length -> N-1 = 50 positions go through the net
D = 128          # hidden dim (multiple of 128: full MXU contraction / lanes)
V = 256          # vocab size (num_tokens), multiple of 128 for lane density
TILE_M = 128     # tokens per grid step (full MXU M-feed; M padded to multiple)


def ar_ce_kernel(ids_ref,                         # VMEM (TILE_M, 1) i32
                 lab_ref,                         # VMEM (TILE_M, 1) i32
                 emb_ref,                         # VMEM (V, D) bf16, resident
                 w1_ref, b1_ref, w2_ref, b2_ref,  # resident weights/biases
                 out_ref,                         # VMEM (1, 1, 128) f32
                 *, m_valid):
    i = pl.program_id(0)
    tile_m = ids_ref.shape[0]
    v = emb_ref.shape[0]
    base = i * tile_m

    col_v = lax.broadcasted_iota(jnp.int32, (tile_m, v), 1)   # vocab column ids

    # --- embedding gather as a one-hot bf16 MXU matmul ----------------------
    # emb is VMEM-resident (64 KiB); onehot @ emb reproduces the bf16 rows
    # exactly (f32 accumulate of 1.0 * bf16 value, then exact bf16 round-trip).
    onehot = (ids_ref[...] == col_v).astype(jnp.bfloat16)     # (TILE_M, V)
    h = jnp.dot(onehot, emb_ref[...],
                preferred_element_type=jnp.float32).astype(jnp.bfloat16)

    # --- synthetic net: ReLU MLP -> vocab projection (bf16 x bf16 -> f32) ---
    hid = jnp.maximum(
        jnp.dot(h, w1_ref[...], preferred_element_type=jnp.float32)
        + b1_ref[...], 0.0)                                   # (TILE_M, D) f32
    logits = (jnp.dot(hid.astype(jnp.bfloat16), w2_ref[...],
                      preferred_element_type=jnp.float32)
              + b2_ref[...])                                  # (TILE_M, V) f32

    # --- cross-entropy: stable log-sum-exp, fused target-logit extraction ---
    m = jnp.max(logits, axis=-1, keepdims=True)
    lse = m + jnp.log(jnp.sum(jnp.exp(logits - m), axis=-1, keepdims=True))
    tgt = jnp.sum(jnp.where(lab_ref[...] == col_v, logits, 0.0),
                  axis=-1, keepdims=True)                     # (TILE_M, 1)

    # Mask out padded rows (M rounded up to a TILE_M multiple).
    row = base + lax.broadcasted_iota(jnp.int32, (tile_m, 1), 0)
    valid = (row < m_valid).astype(jnp.float32)
    partial = jnp.sum((lse - tgt) * valid)                    # tile partial NLL

    # Lane-dense per-tile partial output; final mean reduction happens in JAX.
    lane = lax.broadcasted_iota(jnp.int32, (1, 1, 128), 2)
    out_ref[...] = jnp.where(lane == 0, partial, 0.0)


def init_params(key):
    k_emb, k_w1, k_w2 = jax.random.split(key, 3)
    emb = (0.02 * jax.random.normal(k_emb, (V, D), jnp.float32)).astype(jnp.bfloat16)
    w1 = (0.02 * jax.random.normal(k_w1, (D, D), jnp.float32)).astype(jnp.bfloat16)
    b1 = jnp.zeros((1, D), jnp.float32)
    w2 = (0.02 * jax.random.normal(k_w2, (D, V), jnp.float32)).astype(jnp.bfloat16)
    b2 = jnp.zeros((1, V), jnp.float32)
    return emb, w1, b1, w2, b2


@jax.jit
def autoregressive_wrapper_forward(x, emb, w1, b1, w2, b2):
    """Equivalent of AutoregressiveWrapper.forward(x) -> scalar CE loss."""
    x_inp = x[:, :-1]                       # (B, N-1)
    x_lab = x[:, 1:]                        # (B, N-1)

    m_total = x_inp.shape[0] * x_inp.shape[1]
    num_tiles = pl.cdiv(m_total, TILE_M)
    m_pad = num_tiles * TILE_M

    ids = jnp.pad(x_inp.reshape(-1).astype(jnp.int32),
                  (0, m_pad - m_total)).reshape(m_pad, 1)
    labels = jnp.pad(x_lab.reshape(-1).astype(jnp.int32),
                     (0, m_pad - m_total)).reshape(m_pad, 1)

    grid_spec = pltpu.PrefetchScalarGridSpec(
        num_scalar_prefetch=0,
        grid=(num_tiles,),
        in_specs=[
            pl.BlockSpec((TILE_M, 1), lambda i: (i, 0)),   # token ids
            pl.BlockSpec((TILE_M, 1), lambda i: (i, 0)),   # labels
            pl.BlockSpec((V, D), lambda i: (0, 0)),        # emb (VMEM resident)
            pl.BlockSpec((D, D), lambda i: (0, 0)),        # w1 (resident)
            pl.BlockSpec((1, D), lambda i: (0, 0)),        # b1
            pl.BlockSpec((D, V), lambda i: (0, 0)),        # w2 (resident)
            pl.BlockSpec((1, V), lambda i: (0, 0)),        # b2
        ],
        out_specs=pl.BlockSpec((1, 1, 128), lambda i: (i, 0, 0)),
    )

    # one-hot gather + 2 MLP matmuls
    flops = 2 * m_total * (V * D + D * D + D * V)
    bytes_accessed = (m_pad * 4 * 2                   # ids + labels
                      + (V * D + D * D + D * V) * 2   # bf16 emb + weights
                      + (D + V) * 4                   # f32 biases
                      + num_tiles * 128 * 4)          # partial-sum output

    partials = pl.pallas_call(
        functools.partial(ar_ce_kernel, m_valid=m_total),
        out_shape=jax.ShapeDtypeStruct((num_tiles, 1, 128), jnp.float32),
        grid_spec=grid_spec,
        compiler_params=pltpu.CompilerParams(
            dimension_semantics=("parallel",),      # M tiles independent -> 2 TCs on v7x
            vmem_limit_bytes=32 * 1024 * 1024),     # ~1 MiB footprint; safe on all gens
        cost_estimate=pl.CostEstimate(
            flops=flops, transcendentals=m_total * V,
            bytes_accessed=bytes_accessed),
    )(ids, labels, emb, w1, b1, w2, b2)

    return jnp.sum(partials) / jnp.float32(m_total)


def reference_forward(x, emb, w1, b1, w2, b2):
    """Pure-JAX reference mirroring F.cross_entropy(mean reduction)."""
    x_inp, x_lab = x[:, :-1], x[:, 1:]
    h = emb[x_inp]                                              # (B, N-1, D) bf16
    hid = jnp.maximum(
        jnp.dot(h, w1, preferred_element_type=jnp.float32) + b1[0], 0.0)
    logits = jnp.dot(hid.astype(jnp.bfloat16), w2,
                     preferred_element_type=jnp.float32) + b2[0]  # (B, N-1, V) f32
    logp = jax.nn.log_softmax(logits, axis=-1)
    nll = -jnp.take_along_axis(logp, x_lab[..., None], axis=-1)[..., 0]
    return jnp.mean(nll)


if __name__ == "__main__":
    key = jax.random.PRNGKey(0)
    k_tok, k_par = jax.random.split(key)

    x = jax.random.randint(k_tok, (B, N), 0, V, dtype=jnp.int32)
    emb, w1, b1, w2, b2 = init_params(k_par)

    loss = autoregressive_wrapper_forward(x, emb, w1, b1, w2, b2)
    loss = jax.block_until_ready(loss)

    ref = reference_forward(x, emb, w1, b1, w2, b2)
    assert jnp.allclose(loss, ref, rtol=5e-3, atol=5e-3), (loss, ref)

    # TODO(synk): generate() (top_k filtering + multinomial sampling loop) is
    # inference-only and not part of forward(); not implemented as a kernel.
    print("KERNEL_OK")
</pallas_src>

<mosaic_0001>
module attributes {stable_mosaic.version = 11 : i64} {
  func.func @ar_ce_kernel(%arg0: i32, %arg1: memref<128x1xi32, #tpu.memory_space<vmem>>, %arg2: memref<128x1xi32, #tpu.memory_space<vmem>>, %arg3: memref<256x128xbf16, #tpu.memory_space<vmem>>, %arg4: memref<128x128xbf16, #tpu.memory_space<vmem>>, %arg5: memref<1x128xf32, #tpu.memory_space<vmem>>, %arg6: memref<128x256xbf16, #tpu.memory_space<vmem>>, %arg7: memref<1x256xf32, #tpu.memory_space<vmem>>, %arg8: memref<1x1x128xf32, #tpu.memory_space<vmem>>) attributes {dimension_semantics = [#tpu.dimension_semantics<parallel>], iteration_bounds = array<i64: 2>, scalar_prefetch = 0 : i64, scratch_operands = 0 : i64, tpu.core_type = #tpu.core_type<tc>, window_params = [{transform_indices = @transform_0, window_bounds = array<i64: 128, 1>}, {transform_indices = @transform_1, window_bounds = array<i64: 128, 1>}, {pipeline_mode = #tpu.pipeline_mode<synchronous>, transform_indices = @transform_2, window_bounds = array<i64: 256, 128>}, {pipeline_mode = #tpu.pipeline_mode<synchronous>, transform_indices = @transform_3, window_bounds = array<i64: 128, 128>}, {pipeline_mode = #tpu.pipeline_mode<synchronous>, transform_indices = @transform_4, window_bounds = array<i64: 1, 128>}, {pipeline_mode = #tpu.pipeline_mode<synchronous>, transform_indices = @transform_5, window_bounds = array<i64: 128, 256>}, {pipeline_mode = #tpu.pipeline_mode<synchronous>, transform_indices = @transform_6, window_bounds = array<i64: 1, 256>}, {transform_indices = @transform_7, window_bounds = array<i64: 1, 1, 128>}]} {
    %c128_i32 = arith.constant 128 : i32
    %0 = arith.muli %arg0, %c128_i32 : i32
    %1 = tpu.iota {dimensions = array<i32: 1>} : vector<128x256xi32>
    %c0 = arith.constant 0 : index
    %c0_0 = arith.constant 0 : index
    %2 = vector.load %arg1[%c0, %c0_0] : memref<128x1xi32, #tpu.memory_space<vmem>>, vector<128x1xi32>
    %3 = vector.broadcast %2 : vector<128x1xi32> to vector<128x256xi32>
    %4 = arith.cmpi eq, %3, %1 : vector<128x256xi32>
    %5 = arith.extui %4 : vector<128x256xi1> to vector<128x256xi32>
    %6 = arith.sitofp %5 : vector<128x256xi32> to vector<128x256xf32>
    %7 = arith.truncf %6 : vector<128x256xf32> to vector<128x256xbf16>
    %c0_1 = arith.constant 0 : index
    %c0_2 = arith.constant 0 : index
    %8 = vector.load %arg3[%c0_1, %c0_2] : memref<256x128xbf16, #tpu.memory_space<vmem>>, vector<256x128xbf16>
    %cst = arith.constant dense<0.000000e+00> : vector<128x128xf32>
    %9 = tpu.matmul %7, %8, %cst {dimension_numbers = #tpu.dot_dimension_numbers<[1], [0], [0], [1], [0, 0, 1, 1], [], []>} : vector<128x256xbf16>, vector<256x128xbf16>, vector<128x128xf32> -> vector<128x128xf32>
    %10 = arith.truncf %9 : vector<128x128xf32> to vector<128x128xbf16>
    %c0_3 = arith.constant 0 : index
    %c0_4 = arith.constant 0 : index
    %11 = vector.load %arg4[%c0_3, %c0_4] : memref<128x128xbf16, #tpu.memory_space<vmem>>, vector<128x128xbf16>
    %cst_5 = arith.constant dense<0.000000e+00> : vector<128x128xf32>
    %12 = tpu.matmul %10, %11, %cst_5 {dimension_numbers = #tpu.dot_dimension_numbers<[1], [0], [0], [1], [0, 0, 1, 1], [], []>} : vector<128x128xbf16>, vector<128x128xbf16>, vector<128x128xf32> -> vector<128x128xf32>
    %c0_6 = arith.constant 0 : index
    %c0_7 = arith.constant 0 : index
    %13 = vector.load %arg5[%c0_6, %c0_7] : memref<1x128xf32, #tpu.memory_space<vmem>>, vector<1x128xf32>
    %14 = vector.broadcast %13 : vector<1x128xf32> to vector<128x128xf32>
    %15 = arith.addf %12, %14 : vector<128x128xf32>
    %cst_8 = arith.constant 0.000000e+00 : f32
    %16 = vector.broadcast %cst_8 : f32 to vector<128x128xf32>
    %17 = arith.maximumf %15, %16 : vector<128x128xf32>
    %18 = arith.truncf %17 : vector<128x128xf32> to vector<128x128xbf16>
    %c0_9 = arith.constant 0 : index
    %c0_10 = arith.constant 0 : index
    %19 = vector.load %arg6[%c0_9, %c0_10] : memref<128x256xbf16, #tpu.memory_space<vmem>>, vector<128x256xbf16>
    %cst_11 = arith.constant dense<0.000000e+00> : vector<128x256xf32>
    %20 = tpu.matmul %18, %19, %cst_11 {dimension_numbers = #tpu.dot_dimension_numbers<[1], [0], [0], [1], [0, 0, 1, 1], [], []>} : vector<128x128xbf16>, vector<128x256xbf16>, vector<128x256xf32> -> vector<128x256xf32>
    %c0_12 = arith.constant 0 : index
    %c0_13 = arith.constant 0 : index
    %21 = vector.load %arg7[%c0_12, %c0_13] : memref<1x256xf32, #tpu.memory_space<vmem>>, vector<1x256xf32>
    %22 = vector.broadcast %21 : vector<1x256xf32> to vector<128x256xf32>
    %23 = arith.addf %20, %22 : vector<128x256xf32>
    %cst_14 = arith.constant dense<0xFF800000> : vector<128xf32>
    %24 = vector.multi_reduction <maximumf>, %23, %cst_14 [1] : vector<128x256xf32> to vector<128xf32>
    %25 = vector.shape_cast %24 : vector<128xf32> to vector<128x1xf32>
    %26 = vector.broadcast %25 : vector<128x1xf32> to vector<128x256xf32>
    %27 = arith.subf %23, %26 : vector<128x256xf32>
    %28 = math.exp %27 : vector<128x256xf32>
    %cst_15 = arith.constant dense<0.000000e+00> : vector<128xf32>
    %29 = vector.multi_reduction <add>, %28, %cst_15 [1] : vector<128x256xf32> to vector<128xf32>
    %30 = vector.shape_cast %29 : vector<128xf32> to vector<128x1xf32>
    %31 = math.log %30 : vector<128x1xf32>
    %32 = arith.addf %25, %31 : vector<128x1xf32>
    %c0_16 = arith.constant 0 : index
    %c0_17 = arith.constant 0 : index
    %33 = vector.load %arg2[%c0_16, %c0_17] : memref<128x1xi32, #tpu.memory_space<vmem>>, vector<128x1xi32>
    %34 = vector.broadcast %33 : vector<128x1xi32> to vector<128x256xi32>
    %35 = arith.cmpi eq, %34, %1 : vector<128x256xi32>
    %cst_18 = arith.constant 0.000000e+00 : f32
    %36 = vector.broadcast %cst_18 : f32 to vector<128x256xf32>
    %37 = arith.select %35, %23, %36 : vector<128x256xi1>, vector<128x256xf32>
    %cst_19 = arith.constant dense<0.000000e+00> : vector<128xf32>
    %38 = vector.multi_reduction <add>, %37, %cst_19 [1] : vector<128x256xf32> to vector<128xf32>
    %39 = vector.shape_cast %38 : vector<128xf32> to vector<128x1xf32>
    %40 = tpu.iota {dimensions = array<i32: 0>} : vector<128x1xi32>
    %41 = vector.broadcast %0 : i32 to vector<128x1xi32>
    %42 = arith.addi %41, %40 : vector<128x1xi32>
    %c200_i32 = arith.constant 200 : i32
    %43 = vector.broadcast %c200_i32 : i32 to vector<128x1xi32>
    %44 = arith.cmpi slt, %42, %43 : vector<128x1xi32>
    %45 = arith.extui %44 : vector<128x1xi1> to vector<128x1xi32>
    %46 = arith.sitofp %45 : vector<128x1xi32> to vector<128x1xf32>
    %47 = arith.subf %32, %39 : vector<128x1xf32>
    %48 = arith.mulf %47, %46 : vector<128x1xf32>
    %49 = vector.shape_cast %48 : vector<128x1xf32> to vector<1x128x1xf32>
    %cst_20 = arith.constant dense<0.000000e+00> : vector<1xf32>
    %50 = vector.multi_reduction <add>, %49, %cst_20 [1, 2] : vector<1x128x1xf32> to vector<1xf32>
    %51 = vector.shape_cast %50 : vector<1xf32> to vector<1x1x1xf32>
    %52 = vector.extract %51[0, 0, 0] : f32 from vector<1x1x1xf32>
    %53 = tpu.iota {dimensions = array<i32: 2>} : vector<1x1x128xi32>
    %c0_i32 = arith.constant 0 : i32
    %54 = vector.broadcast %c0_i32 : i32 to vector<1x1x128xi32>
    %55 = arith.cmpi eq, %53, %54 : vector<1x1x128xi32>
    %cst_21 = arith.constant 0.000000e+00 : f32
    %56 = vector.broadcast %52 : f32 to vector<1x1x128xf32>
    %57 = vector.broadcast %cst_21 : f32 to vector<1x1x128xf32>
    %58 = arith.select %55, %56, %57 : vector<1x1x128xi1>, vector<1x1x128xf32>
    %c0_22 = arith.constant 0 : index
    %c0_23 = arith.constant 0 : index
    %c0_24 = arith.constant 0 : index
    %59 = vector.load %arg8[%c0_22, %c0_23, %c0_24] : memref<1x1x128xf32, #tpu.memory_space<vmem>>, vector<1x1x128xf32>
    tpu.vector_store %arg8[%c0_22, %c0_23, %c0_24], %58 {strides = array<i32>} : memref<1x1x128xf32, #tpu.memory_space<vmem>>, vector<1x1x128xf32>,
    return
  }
  func.func @transform_0(%arg0: i32) -> (i32, i32) {
    %c0_i32 = arith.constant 0 : i32
    %c0_i32_0 = arith.constant 0 : i32
    return %arg0, %c0_i32 : i32, i32
  }
  func.func @transform_1(%arg0: i32) -> (i32, i32) {
    %c0_i32 = arith.constant 0 : i32
    %c0_i32_0 = arith.constant 0 : i32
    return %arg0, %c0_i32 : i32, i32
  }
  func.func @transform_2(%arg0: i32) -> (i32, i32) {
    %c0_i32 = arith.constant 0 : i32
    %c0_i32_0 = arith.constant 0 : i32
    %c0_i32_1 = arith.constant 0 : i32
    return %c0_i32, %c0_i32_0 : i32, i32
  }
  func.func @transform_3(%arg0: i32) -> (i32, i32) {
    %c0_i32 = arith.constant 0 : i32
    %c0_i32_0 = arith.constant 0 : i32
    %c0_i32_1 = arith.constant 0 : i32
    return %c0_i32, %c0_i32_0 : i32, i32
  }
  func.func @transform_4(%arg0: i32) -> (i32, i32) {
    %c0_i32 = arith.constant 0 : i32
    %c0_i32_0 = arith.constant 0 : i32
    %c0_i32_1 = arith.constant 0 : i32
    return %c0_i32, %c0_i32_0 : i32, i32
  }
  func.func @transform_5(%arg0: i32) -> (i32, i32) {
    %c0_i32 = arith.constant 0 : i32
    %c0_i32_0 = arith.constant 0 : i32
    %c0_i32_1 = arith.constant 0 : i32
    return %c0_i32, %c0_i32_0 : i32, i32
  }
  func.func @transform_6(%arg0: i32) -> (i32, i32) {
    %c0_i32 = arith.constant 0 : i32
    %c0_i32_0 = arith.constant 0 : i32
    %c0_i32_1 = arith.constant 0 : i32
    return %c0_i32, %c0_i32_0 : i32, i32
  }
  func.func @transform_7(%arg0: i32) -> (i32, i32, i32) {
    %c0_i32 = arith.constant 0 : i32
    %c0_i32_0 = arith.constant 0 : i32
    %c0_i32_1 = arith.constant 0 : i32
    return %arg0, %c0_i32, %c0_i32_0 : i32, i32, i32
  }
}

</mosaic_0001>

<bundles_post_ra>
// kernel: autoregressive_wrapper_forward.1
= control target key start
LH: loop header
LB: loop body
LE: loop exit
PB: predicated region body
PF: predicated region fallthrough
CT: control target
= control target key end

     0   :  { %s2231_s24 = smov 0   ;;  %s2934_s0 = inlined_call_operand.vmem [shape: s32[256,1], index: 0, kind: input, shape index: {}]   ;;  %s2935_s1 = inlined_call_operand.vmem [shape: s32[256,1], index: 1, kind: input, shape index: {}]   ;;  %s2936_s2 = inlined_call_operand.vmem [shape: bf16[256,128], index: 2, kind: input, shape index: {}]   ;;  %s2937_s3 = inlined_call_operand.vmem [shape: bf16[128,128], index: 3, kind: input, shape index: {}]   ;;  %s2938_s4 = inlined_call_operand.vmem [shape: f32[1,128], index: 4, kind: input, shape index: {}]   ;;  %s2939_s5 = inlined_call_operand.vmem [shape: bf16[128,256], index: 5, kind: input, shape index: {}]   ;;  %s2940_s6 = inlined_call_operand.vmem [shape: f32[1,256], index: 6, kind: input, shape index: {}]   ;;  %s2941_s7 = inlined_call_operand.vmem [shape: f32[2,1,128], index: 7, kind: output, shape index: {}]  }
   0x1 LB: > { %s2237_s25 = sadd.s32 4294967295, %s2186_s24   ;;  %p1764_p0 = scmp.ge.s32.totalorder %s2186_s24, 1  ;;  %s2186_s24 = sphi %s2231_s24, %s17_s24  }
   0x2   : > { %p249_p1 = scmp.lt.s32.totalorder %s2186_s24, 3 }
   0x4   : > { %p250_p2 = pnand %p1764_p0, %p249_p1 }
   0x6   : > { %253 = sbr.rel (%p250_p2) target bundleno = 1378 (0x562), region = 48 }
   0xb   : > { %s1765_s26 = sshll.u32 %s2237_s25, 4  ;;  %v2188_v0 = vmov 0   ;;  %v2036_v1 = vld [vmem:[%s2936_s2 + $0x78] sm:$0xff]   ;;  %v2038_v3 = vld [vmem:[%s2936_s2 + $0x70] sm:$0xff]   ;;  %v2040_v5 = vld [vmem:[%s2936_s2 + $0x68] sm:$0xff]   ;;  %v301_v50 = vlaneseq  ;;  %p296_p4 = scmp.lt.s32.totalorder %s2237_s25, 1 }
   0xc   : > { %2035 = vset.pattern.permute.xlu1 %v2188_v0  ;;  %2034 = vset.pattern.permute.xlu0 %v2188_v0  ;;  %p285_p3 = scmp.lt.s32.totalorder %s1765_s26, 31  ;;  %v2037_v2 = vld [vmem:[%s2936_s2 + $0x38] sm:$0xff]   ;;  %v2039_v4 = vld [vmem:[%s2936_s2 + $0x30] sm:$0xff]   ;;  %v2041_v10 = vld [vmem:[%s2936_s2 + $0x28] sm:$0xff]   ;;  %v2189_v57 = vmov 1.0|1.0  }
   0xd   : > { %1893 = vmatprep.subr.bf16.mxu0 %v2036_v1  ;;  %v2042_v15 = vld [vmem:[%s2936_s2 + $0x60] sm:$0xff]   ;;  %v2044_v17 = vld [vmem:[%s2936_s2 + $0x58] sm:$0xff]   ;;  %v2046_v21 = vld [vmem:[%s2936_s2 + $0x50] sm:$0xff]   ;;  %v2351_v51 = vand.u32 127, %v301_v50 }
   0xe   : > { %s2961_s26 = smov (!%p285_p3, %s1765_s26), 31  ;;  %1894 = vmatpush3.bf16.msra.mxu0 %v2037_v2  ;;  %v2043_v16 = vld [vmem:[%s2936_s2 + $0x20] sm:$0xff]   ;;  %v2045_v19 = vld [vmem:[%s2936_s2 + $0x18] sm:$0xff]   ;;  %v2047_v24 = vld [vmem:[%s2936_s2 + $0x10] sm:$0xff]  }
   0xf   : > { %s1766_s10 = sshll.u32 %s2961_s26, 3  ;;  %1895 = vmatprep.subr.bf16.mxu0 %v2038_v3  ;;  %v2048_v25 = vld [vmem:[%s2936_s2 + $0x48] sm:$0xff]   ;;  %v2050_v29 = vld [vmem:[%s2936_s2 + $0x40] sm:$0xff]   ;;  %v2052_v46 = vld [vmem:[%s2937_s3 + $0x38] sm:$0xff]   ;;  %v2354_v54 = vadd.s32 128, %v2351_v51 }
  0x10   : > { %s2264_s15 = scalar_lea.vmem %s2934_s0, %s1766_s10  ;;  %v2049_v26 = vld [vmem:[%s2936_s2 + $0x8] sm:$0xff]   ;;  %v2051_v30 = vld [vmem:[%s2936_s2] sm:$0xff]   ;;  %s2323_s27 = scalar_lea.vmem %s2935_s1, %s1766_s10  ;;  %v2053_v47 = vld [vmem:[%s2937_s3 + $0x30] sm:$0xff]   ;;  %1973 = vmatprep.subr.bf16.mxu1 %v2052_v46 }
  0x11   : > { %v306_v6 = vld [vmem:[%s2264_s15 + $0x10] sm:$0xff]  ;;  %v304_v7 = vld [vmem:[%s2264_s15] sm:$0xff]  ;;  %v307_v8 = vld [vmem:[%s2264_s15 + $0x18] sm:$0xff]  ;;  %1974 = vmatpush3.bf16.msra.mxu1 %v2052_v46 }
  0x12   : > { %327 = vperm.xlu1 %2035, %v306_v6   ;;  %321 = vperm.xlu0 %2034, %v304_v7   ;;  %v305_v9 = vld [vmem:[%s2264_s15 + $0x8] sm:$0xff]  ;;  %v308_v12 = vld [vmem:[%s2264_s15 + $0x20] sm:$0xff]  ;;  %v311_v13 = vld [vmem:[%s2264_s15 + $0x38] sm:$0xff] }
  0x13   : > { %1896 = vmatpush3.bf16.msra.mxu0 %v2039_v4  ;;  %v309_v11 = vld [vmem:[%s2264_s15 + $0x28] sm:$0xff]  ;;  %v310_v14 = vld [vmem:[%s2264_s15 + $0x30] sm:$0xff]  ;;  %v312_v20 = vld [vmem:[%s2264_s15 + $0x40] sm:$0xff]  ;;  %1975 = vmatprep.subr.bf16.mxu1 %v2053_v47 }
  0x14   : > { %1897 = vmatprep.subr.bf16.mxu0 %v2040_v5  ;;  %v313_v18 = vld [vmem:[%s2264_s15 + $0x48] sm:$0xff]  ;;  %v315_v22 = vld [vmem:[%s2264_s15 + $0x58] sm:$0xff]  ;;  %v314_v23 = vld [vmem:[%s2264_s15 + $0x50] sm:$0xff] }
  0x15   : > { %v317_v27 = vld [vmem:[%s2264_s15 + $0x68] sm:$0xff]  ;;  %v316_v28 = vld [vmem:[%s2264_s15 + $0x60] sm:$0xff]  ;;  %v319_v31 = vld [vmem:[%s2264_s15 + $0x78] sm:$0xff]  ;;  %1976 = vmatpush3.bf16.msra.mxu1 %v2053_v47 }
  0x16   : > { %330 = vperm.xlu1 %2035, %v307_v8   ;;  %324 = vperm.xlu0 %2034, %v305_v9   ;;  %v318_v32 = vld [vmem:[%s2264_s15 + $0x70] sm:$0xff]  ;;  %v1366_v33 = vld [vmem:[%s2323_s27] sm:$0xff]  ;;  %v1367_v34 = vld [vmem:[%s2323_s27 + $0x8] sm:$0xff] }
  0x17   : > { %1898 = vmatpush3.bf16.msra.mxu0 %v2041_v10  ;;  %v1368_v35 = vld [vmem:[%s2323_s27 + $0x10] sm:$0xff]  ;;  %v1370_v36 = vld [vmem:[%s2323_s27 + $0x20] sm:$0xff]  ;;  %v1369_v37 = vld [vmem:[%s2323_s27 + $0x18] sm:$0xff] }
  0x18   : > { %1899 = vmatprep.subr.bf16.mxu0 %v2042_v15  ;;  %v1372_v38 = vld [vmem:[%s2323_s27 + $0x30] sm:$0xff]  ;;  %v1371_v39 = vld [vmem:[%s2323_s27 + $0x28] sm:$0xff]  ;;  %v1374_v40 = vld [vmem:[%s2323_s27 + $0x40] sm:$0xff] }
  0x19   : > { %v1373_v41 = vld [vmem:[%s2323_s27 + $0x38] sm:$0xff]  ;;  %v1376_v42 = vld [vmem:[%s2323_s27 + $0x50] sm:$0xff]  ;;  %v1375_v43 = vld [vmem:[%s2323_s27 + $0x48] sm:$0xff] }
  0x1a   : > { %336 = vperm.xlu1 %2035, %v309_v11   ;;  %333 = vperm.xlu0 %2034, %v308_v12   ;;  %v1378_v44 = vld [vmem:[%s2323_s27 + $0x60] sm:$0xff]  ;;  %v1377_v45 = vld [vmem:[%s2323_s27 + $0x58] sm:$0xff]  ;;  %v2054_v48 = vld [vmem:[%s2937_s3 + $0x28] sm:$0xff]  }
  0x1b   : > { %1900 = vmatpush3.bf16.msra.mxu0 %v2043_v16  ;;  %1977 = vmatprep.subr.bf16.mxu1 %v2054_v48  ;;  %v2055_v49 = vld [vmem:[%s2937_s3 + $0x20] sm:$0xff]   ;;  %v2056_v7 = vld [vmem:[%s2937_s3 + $0x18] sm:$0xff]   ;;  %v2057_v8 = vld [vmem:[%s2937_s3 + $0x10] sm:$0xff]  }
  0x1c   : > { %1901 = vmatprep.subr.bf16.mxu0 %v2044_v17  ;;  %1978 = vmatpush3.bf16.msra.mxu1 %v2054_v48  ;;  %v2058_v9 = vld [vmem:[%s2937_s3 + $0x8] sm:$0xff]   ;;  %v2059_v10 = vld [vmem:[%s2937_s3] sm:$0xff]   ;;  %v2060_v11 = vld [vmem:[%s2939_s5 + $0x70] ss:$8 sps:$4 sm:$0xff]  }
  0x1d   : > { %1979 = vmatprep.subr.bf16.mxu1 %v2055_v49  ;;  %v2062_v12 = vld [vmem:[%s2939_s5 + $0x74] ss:$8 sps:$4 sm:$0xff]   ;;  %v2066_v16 = vld [vmem:[%s2939_s5 + $0x50] ss:$8 sps:$4 sm:$0xff]   ;;  %v2071_v17 = vld [vmem:[%s2939_s5 + $0x44] ss:$8 sps:$4 sm:$0xff]  }
  0x1e   : > { %342 = vperm.xlu1 %2035, %v311_v13   ;;  %339 = vperm.xlu0 %2034, %v310_v14   ;;  %v2065_v13 = vld [vmem:[%s2939_s5 + $0x64] ss:$8 sps:$4 sm:$0xff]   ;;  %v2063_v14 = vld [vmem:[%s2939_s5 + $0x60] ss:$8 sps:$4 sm:$0xff]   ;;  %v2068_v15 = vld [vmem:[%s2939_s5 + $0x54] ss:$8 sps:$4 sm:$0xff]  }
  0x1f   : > { %1902 = vmatpush3.bf16.msra.mxu0 %v2045_v19  ;;  %v2074_v19 = vld [vmem:[%s2939_s5 + $0x34] ss:$8 sps:$4 sm:$0xff]  }
  0x20   : > { %1903 = vmatprep.subr.bf16.mxu0 %v2046_v21  ;;  %1980 = vmatpush3.bf16.msra.mxu1 %v2055_v49  ;;  %v2077_v21 = vld [vmem:[%s2939_s5 + $0x24] ss:$8 sps:$4 sm:$0xff]  }
  0x21   : > { %1981 = vmatprep.subr.bf16.mxu1 %v2056_v7 }
  0x22   : > { %348 = vperm.xlu1 %2035, %v313_v18   ;;  %345 = vperm.xlu0 %2034, %v312_v20   ;;  %v2069_v18 = vld [vmem:[%s2939_s5 + $0x40] ss:$8 sps:$4 sm:$0xff]   ;;  %v2072_v20 = vld [vmem:[%s2939_s5 + $0x30] ss:$8 sps:$4 sm:$0xff]  }
  0x23   : > { %1904 = vmatpush3.bf16.msra.mxu0 %v2047_v24  ;;  %v2078_v24 = vld [vmem:[%s2939_s5 + $0x10] ss:$8 sps:$4 sm:$0xff]  }
  0x24   : > { %1905 = vmatprep.subr.bf16.mxu0 %v2048_v25  ;;  %1982 = vmatpush3.bf16.msra.mxu1 %v2056_v7 }
  0x25   : > { %1983 = vmatprep.subr.bf16.mxu1 %v2057_v8 }
  0x26   : > { %354 = vperm.xlu1 %2035, %v315_v22   ;;  %351 = vperm.xlu0 %2034, %v314_v23   ;;  %v2075_v22 = vld [vmem:[%s2939_s5 + $0x20] ss:$8 sps:$4 sm:$0xff]   ;;  %v2080_v23 = vld [vmem:[%s2939_s5 + $0x14] ss:$8 sps:$4 sm:$0xff]  }
  0x27   : > { %1906 = vmatpush3.bf16.msra.mxu0 %v2049_v26 }
  0x28   : > { %1907 = vmatprep.subr.bf16.mxu0 %v2050_v29  ;;  %1984 = vmatpush3.bf16.msra.mxu1 %v2057_v8 }
  0x29   : > { %1985 = vmatprep.subr.bf16.mxu1 %v2058_v9 }
  0x2a   : > { %360 = vperm.xlu1 %2035, %v317_v27   ;;  %357 = vperm.xlu0 %2034, %v316_v28  }
  0x2b   : > { %1908 = vmatpush3.bf16.msra.mxu0 %v2051_v30 }
  0x2c   : > { %1986 = vmatpush3.bf16.msra.mxu1 %v2058_v9  ;;  %1013 = vmatprep.subr.bf16.mxu0 %v2062_v12 }
  0x2d   : > { %1987 = vmatprep.subr.bf16.mxu1 %v2059_v10 }
  0x2e   : > { %366 = vperm.xlu1 %2035, %v319_v31   ;;  %363 = vperm.xlu0 %2034, %v318_v32  }
  0x30   : > { %1988 = vmatpush3.bf16.msra.mxu1 %v2059_v10 }
  0x31   : > { %2005 = vmatprep.subr.bf16.mxu1 %v2062_v12 }
  0x32   : > { %1383 = vperm.xlu1 %2035, %v1366_v33   ;;  %1386 = vperm.xlu0 %2034, %v1367_v34  }
  0x36   : > { %1389 = vperm.xlu1 %2035, %v1368_v35   ;;  %1395 = vperm.xlu0 %2034, %v1370_v36  }
  0x3a   : > { %1392 = vperm.xlu1 %2035, %v1369_v37   ;;  %1401 = vperm.xlu0 %2034, %v1372_v38  }
  0x3e   : > { %1398 = vperm.xlu1 %2035, %v1371_v39   ;;  %1407 = vperm.xlu0 %2034, %v1374_v40  }
  0x42   : > { %1404 = vperm.xlu1 %2035, %v1373_v41   ;;  %1413 = vperm.xlu0 %2034, %v1376_v42  }
  0x46   : > { %1410 = vperm.xlu1 %2035, %v1375_v43   ;;  %1419 = vperm.xlu0 %2034, %v1378_v44  }
  0x4a   : > { %1416 = vperm.xlu1 %2035, %v1377_v45  }
  0x8d   : > { %v328_v52 = vpop.permute.xlu1 %327  ;;  %v322_v53 = vpop.permute.xlu0 %321 }
  0x8e   : > { %vm373_vm0 = vcmp.eq.s32.totalorder %v328_v52, %v2354_v54  ;;  %vm368_vm4 = vcmp.eq.s32.totalorder %v322_v53, %v2351_v51  ;;  %vm369_vm7 = vcmp.eq.s32.totalorder %v322_v53, %v2354_v54  ;;  %vm372_vm9 = vcmp.eq.s32.totalorder %v328_v52, %v2351_v51 }
  0x91   : > { %v331_v55 = vpop.permute.xlu1 %330  ;;  %v325_v56 = vpop.permute.xlu0 %324 }
  0x92   : > { %vm375_vm1 = vcmp.eq.s32.totalorder %v331_v55, %v2354_v54  ;;  %vm370_vm2 = vcmp.eq.s32.totalorder %v325_v56, %v2351_v51  ;;  %vm371_vm3 = vcmp.eq.s32.totalorder %v325_v56, %v2354_v54  ;;  %vm374_vm10 = vcmp.eq.s32.totalorder %v331_v55, %v2351_v51 }
  0x93   : > { %vm1822_vm5 = vmpackc.low %vm375_vm1, %vm373_vm0 }
  0x94   : > { %vm1820_vm6 = vmpackc.low %vm370_vm2, %vm368_vm4 }
  0x95   : > { %vm1818_vm8 = vmpackc.low %vm371_vm3, %vm369_vm7  ;;  %v337_v58 = vpop.permute.xlu1 %336  ;;  %v334_v59 = vpop.permute.xlu0 %333 }
  0x96   : > { %1819 = vmatprep.mubr.msk.bf16.mxu0 %vm1818_vm8, %v2189_v57  ;;  %vm379_vm11 = vcmp.eq.s32.totalorder %v337_v58, %v2354_v54  ;;  %vm377_vm12 = vcmp.eq.s32.totalorder %v334_v59, %v2354_v54  ;;  %vm1824_vm13 = vmpackc.low %vm374_vm10, %vm372_vm9  ;;  %vm378_vm15 = vcmp.eq.s32.totalorder %v337_v58, %v2351_v51  ;;  %vm376_vm0 = vcmp.eq.s32.totalorder %v334_v59, %v2351_v51 }
  0x97   : > { %1821 = vmatmul.mubr.msk.bf16.vlgmr.msra.gmra.mxu0 %vm1820_vm6, %v2189_v57  ;;  %vm1826_vm14 = vmpackc.low %vm379_vm11, %vm377_vm12 }
  0x98   : > { %1823 = vmatprep.mubr.msk.bf16.mxu0 %vm1822_vm5, %v2189_v57  ;;  %vm1828_vm3 = vmpackc.low %vm378_vm15, %vm376_vm0  ;;  %1014 = vmatpush1.bf16.msra.mxu0 %v2060_v11 }
  0x99   : > { %v343_v60 = vpop.permute.xlu1 %342  ;;  %v340_v61 = vpop.permute.xlu0 %339  ;;  %1015 = vmatprep.subr.bf16.mxu0 %v2065_v13 }
  0x9a   : > { %vm383_vm1 = vcmp.eq.s32.totalorder %v343_v60, %v2354_v54  ;;  %vm381_vm2 = vcmp.eq.s32.totalorder %v340_v61, %v2354_v54  ;;  %vm382_vm5 = vcmp.eq.s32.totalorder %v343_v60, %v2351_v51  ;;  %vm380_vm6 = vcmp.eq.s32.totalorder %v340_v61, %v2351_v51 }
  0x9b   : > { %vm1830_vm4 = vmpackc.low %vm383_vm1, %vm381_vm2 }
  0x9c   : > { %vm1832_vm9 = vmpackc.low %vm382_vm5, %vm380_vm6  ;;  %1016 = vmatpush1.bf16.msra.mxu0 %v2063_v14 }
  0x9d   : > { %v349_v62 = vpop.permute.xlu1 %348  ;;  %v346_v63 = vpop.permute.xlu0 %345  ;;  %1017 = vmatprep.subr.bf16.mxu0 %v2068_v15 }
  0x9e   : > { %vm387_vm7 = vcmp.eq.s32.totalorder %v349_v62, %v2354_v54  ;;  %vm385_vm8 = vcmp.eq.s32.totalorder %v346_v63, %v2354_v54  ;;  %vm386_vm11 = vcmp.eq.s32.totalorder %v349_v62, %v2351_v51  ;;  %vm384_vm12 = vcmp.eq.s32.totalorder %v346_v63, %v2351_v51 }
  0x9f   : > { %1825 = vmatmul.mubr.msk.bf16.gmra.mxu0 %vm1824_vm13, %v2189_v57  ;;  %vm1834_vm10 = vmpackc.low %vm387_vm7, %vm385_vm8 }
  0xa0   : > { %1827 = vmatprep.mubr.msk.bf16.mxu0 %vm1826_vm14, %v2189_v57  ;;  %vm1836_vm15 = vmpackc.low %vm386_vm11, %vm384_vm12  ;;  %1018 = vmatpush1.bf16.msra.mxu0 %v2066_v16 }
  0xa1   : > { %v355_v1 = vpop.permute.xlu1 %354  ;;  %v352_v2 = vpop.permute.xlu0 %351  ;;  %1019 = vmatprep.subr.bf16.mxu0 %v2071_v17 }
  0xa2   : > { %vm391_vm13 = vcmp.eq.s32.totalorder %v355_v1, %v2354_v54  ;;  %vm389_vm14 = vcmp.eq.s32.totalorder %v352_v2, %v2354_v54  ;;  %vm390_vm1 = vcmp.eq.s32.totalorder %v355_v1, %v2351_v51  ;;  %vm388_vm2 = vcmp.eq.s32.totalorder %v352_v2, %v2351_v51 }
  0xa3   : > { %vm1838_vm0 = vmpackc.low %vm391_vm13, %vm389_vm14 }
  0xa4   : > { %vm1840_vm5 = vmpackc.low %vm390_vm1, %vm388_vm2  ;;  %1020 = vmatpush1.bf16.msra.mxu0 %v2069_v18 }
  0xa5   : > { %v361_v3 = vpop.permute.xlu1 %360  ;;  %v358_v4 = vpop.permute.xlu0 %357  ;;  %1021 = vmatprep.subr.bf16.mxu0 %v2074_v19 }
  0xa6   : > { %vm394_vm7 = vcmp.eq.s32.totalorder %v361_v3, %v2351_v51  ;;  %vm392_vm8 = vcmp.eq.s32.totalorder %v358_v4, %v2351_v51 }
  0xa7   : > { %1829 = vmatmul.mubr.msk.bf16.gmra.mxu0 %vm1828_vm3, %v2189_v57  ;;  %vm395_vm3 = vcmp.eq.s32.totalorder %v361_v3, %v2354_v54  ;;  %vm1844_vm11 = vmpackc.low %vm394_vm7, %vm392_vm8 }
  0xa8   : > { %1831 = vmatprep.mubr.msk.bf16.mxu0 %vm1830_vm4, %v2189_v57  ;;  %vm393_vm4 = vcmp.eq.s32.totalorder %v358_v4, %v2354_v54  ;;  %1022 = vmatpush1.bf16.msra.mxu0 %v2072_v20 }
  0xa9   : > { %vm1842_vm6 = vmpackc.low %vm395_vm3, %vm393_vm4  ;;  %v367_v5 = vpop.permute.xlu1 %366  ;;  %v364_v6 = vpop.permute.xlu0 %363  ;;  %1023 = vmatprep.subr.bf16.mxu0 %v2077_v21 }
  0xaa   : > { %vm398_vm13 = vcmp.eq.s32.totalorder %v367_v5, %v2351_v51  ;;  %vm396_vm14 = vcmp.eq.s32.totalorder %v364_v6, %v2351_v51 }
  0xac   : > { %1024 = vmatpush1.bf16.msra.mxu0 %v2075_v22 }
  0xad   : > { %1025 = vmatprep.subr.bf16.mxu0 %v2080_v23 }
  0xaf   : > { %1833 = vmatmul.mubr.msk.bf16.gmra.mxu0 %vm1832_vm9, %v2189_v57  ;;  %vm399_vm9 = vcmp.eq.s32.totalorder %v367_v5, %v2354_v54 }
  0xb0   : > { %1835 = vmatprep.mubr.msk.bf16.mxu0 %vm1834_vm10, %v2189_v57  ;;  %vm397_vm10 = vcmp.eq.s32.totalorder %v364_v6, %v2354_v54  ;;  %1026 = vmatpush1.bf16.msra.mxu0 %v2078_v24 }
  0xb1   : > { %vm1846_vm12 = vmpackc.low %vm399_vm9, %vm397_vm10 }
  0xb7   : > { %1837 = vmatmul.mubr.msk.bf16.gmra.mxu0 %vm1836_vm15, %v2189_v57  ;;  %vm1848_vm15 = vmpackc.low %vm398_vm13, %vm396_vm14 }
  0xb8   : > { %1839 = vmatprep.mubr.msk.bf16.mxu0 %vm1838_vm0, %v2189_v57 }
  0xbf   : > { %1841 = vmatmul.mubr.msk.bf16.gmra.mxu0 %vm1840_vm5, %v2189_v57 }
  0xc0   : > { %1843 = vmatprep.mubr.msk.bf16.mxu0 %vm1842_vm6, %v2189_v57 }
  0xc7   : > { %1845 = vmatmul.mubr.msk.bf16.gmra.mxu0 %vm1844_vm11, %v2189_v57 }
  0xc8   : > { %1847 = vmatprep.mubr.msk.bf16.mxu0 %vm1846_vm12, %v2189_v57 }
  0xcf   : > { %1849 = vmatmul.mubr.msk.bf16.gmra.mxu0 %vm1848_vm15, %v2189_v57 }
  0xd0   : > { %1045 = vmatprep.mubr.bf16.mxu0 %v2188_v0 }
 0x157   : > { %v1909_v25 = vpop.f32.mrf.mxu0 }
 0x159   : > { %v1910_v26 = vpop.f32.mrf.mxu0 }
 0x15a   : > { %v1911_v29 = vadd.f32 %v1910_v26, %v1909_v25  ;;  %v1850_v25 = vld [vmem:[%s2938_s4] ss:$0 sm:$0xff] }
 0x15b   : > { %v1912_v27 = vpop.f32.mrf.mxu0 }
 0x15d   : > { %v1913_v28 = vpop.f32.mrf.mxu0 }
 0x15e   : > { %v1914_v30 = vadd.f32 %v1913_v28, %v1912_v27 }
 0x15f   : > { %v1915_v31 = vpop.f32.mrf.mxu0 }
 0x160   : > { %v705_v32 = vpack.c.bf16 %v1914_v30, %v1911_v29 }
 0x161   : > { %v1916_v33 = vpop.f32.mrf.mxu0 }
 0x162   : > { %1989 = vmatprep.mubr.bf16.mxu1 %v705_v32  ;;  %v1917_v36 = vadd.f32 %v1916_v33, %v1915_v31 }
 0x163   : > { %v1918_v34 = vpop.f32.mrf.mxu0 }
 0x165   : > { %v1919_v35 = vpop.f32.mrf.mxu0 }
 0x166   : > { %v1920_v37 = vadd.f32 %v1919_v35, %v1918_v34 }
 0x167   : > { %v1921_v38 = vpop.f32.mrf.mxu0 }
 0x168   : > { %v706_v39 = vpack.c.bf16 %v1920_v37, %v1917_v36 }
 0x169   : > { %v1922_v40 = vpop.f32.mrf.mxu0 }
 0x16a   : > { %1990 = vmatmul.mubr.bf16.vlgmr.msra.gmra.mxu1 %v706_v39  ;;  %v1923_v43 = vadd.f32 %v1922_v40, %v1921_v38 }
 0x16b   : > { %v1924_v41 = vpop.f32.mrf.mxu0  ;;  %2013 = vmatpush1.bf16.msra.mxu1 %v2060_v11 }
 0x16c   : > { %2006 = vmatprep.subr.bf16.mxu1 %v2065_v13 }
 0x16d   : > { %v1925_v42 = vpop.f32.mrf.mxu0 }
 0x16e   : > { %v1926_v44 = vadd.f32 %v1925_v42, %v1924_v41 }
 0x16f   : > { %v1927_v45 = vpop.f32.mrf.mxu0  ;;  %2014 = vmatpush1.bf16.msra.mxu1 %v2063_v14 }
 0x170   : > { %v707_v46 = vpack.c.bf16 %v1926_v44, %v1923_v43  ;;  %2007 = vmatprep.subr.bf16.mxu1 %v2068_v15 }
 0x171   : > { %v1928_v47 = vpop.f32.mrf.mxu0 }
 0x172   : > { %1993 = vmatprep.mubr.bf16.mxu1 %v707_v46  ;;  %v1929_v52 = vadd.f32 %v1928_v47, %v1927_v45 }
 0x173   : > { %v1930_v48 = vpop.f32.mrf.mxu0  ;;  %2015 = vmatpush1.bf16.msra.mxu1 %v2066_v16 }
 0x174   : > { %2008 = vmatprep.subr.bf16.mxu1 %v2071_v17 }
 0x175   : > { %v1931_v49 = vpop.f32.mrf.mxu0 }
 0x176   : > { %v1932_v53 = vadd.f32 %v1931_v49, %v1930_v48 }
 0x177   : > { %v1933_v55 = vpop.f32.mrf.mxu0  ;;  %2016 = vmatpush1.bf16.msra.mxu1 %v2069_v18 }
 0x178   : > { %v708_v56 = vpack.c.bf16 %v1932_v53, %v1929_v52  ;;  %2009 = vmatprep.subr.bf16.mxu1 %v2074_v19 }
 0x179   : > { %v1934_v57 = vpop.f32.mrf.mxu0 }
 0x17a   : > { %1994 = vmatmul.mubr.bf16.gmra.mxu1 %v708_v56  ;;  %v1935_v60 = vadd.f32 %v1934_v57, %v1933_v55 }
 0x17b   : > { %v1936_v58 = vpop.f32.mrf.mxu0  ;;  %2017 = vmatpush1.bf16.msra.mxu1 %v2072_v20 }
 0x17c   : > { %2010 = vmatprep.subr.bf16.mxu1 %v2077_v21  ;;  %v2083_v21 = vld [vmem:[%s2939_s5 + $0x4] ss:$8 sps:$4 sm:$0xff]  }
 0x17d   : > { %v1937_v59 = vpop.f32.mrf.mxu0  ;;  %1027 = vmatprep.subr.bf16.mxu0 %v2083_v21 }
 0x17e   : > { %v1938_v61 = vadd.f32 %v1937_v59, %v1936_v58 }
 0x17f   : > { %v1939_v62 = vpop.f32.mrf.mxu0  ;;  %2018 = vmatpush1.bf16.msra.mxu1 %v2075_v22  ;;  %v2081_v22 = vld [vmem:[%s2939_s5] ss:$8 sps:$4 sm:$0xff]  }
 0x180   : > { %v709_v63 = vpack.c.bf16 %v1938_v61, %v1935_v60  ;;  %2011 = vmatprep.subr.bf16.mxu1 %v2080_v23  ;;  %1028 = vmatpush1.bf16.msra.mxu0 %v2081_v22 }
 0x181   : > { %v1940_v1 = vpop.f32.mrf.mxu0 }
 0x182   : > { %1997 = vmatprep.mubr.bf16.mxu1 %v709_v63  ;;  %v1941_v4 = vadd.f32 %v1940_v1, %v1939_v62 }
 0x183   : > { %v1942_v2 = vpop.f32.mrf.mxu0  ;;  %2019 = vmatpush1.bf16.msra.mxu1 %v2078_v24 }
 0x184   : > { %2012 = vmatprep.subr.bf16.mxu1 %v2083_v21 }
 0x185   : > { %v1943_v3 = vpop.f32.mrf.mxu0 }
 0x186   : > { %v1944_v5 = vadd.f32 %v1943_v3, %v1942_v2 }
 0x187   : > { %v1945_v6 = vpop.f32.mrf.mxu0  ;;  %2020 = vmatpush1.bf16.msra.mxu1 %v2081_v22 }
 0x188   : > { %v710_v7 = vpack.c.bf16 %v1944_v5, %v1941_v4 }
 0x189   : > { %v1946_v8 = vpop.f32.mrf.mxu0 }
 0x18a   : > { %1998 = vmatmul.mubr.bf16.gmra.mxu1 %v710_v7  ;;  %v1947_v11 = vadd.f32 %v1946_v8, %v1945_v6 }
 0x18b   : > { %v1948_v9 = vpop.f32.mrf.mxu0 }
 0x18d   : > { %v1949_v10 = vpop.f32.mrf.mxu0 }
 0x18e   : > { %v1950_v12 = vadd.f32 %v1949_v10, %v1948_v9 }
 0x18f   : > { %v1951_v13 = vpop.f32.mrf.mxu0 }
 0x190   : > { %v711_v14 = vpack.c.bf16 %v1950_v12, %v1947_v11 }
 0x191   : > { %v1952_v15 = vpop.f32.mrf.mxu0 }
 0x192   : > { %2001 = vmatprep.mubr.bf16.mxu1 %v711_v14  ;;  %v1953_v18 = vadd.f32 %v1952_v15, %v1951_v13 }
 0x193   : > { %v1954_v16 = vpop.f32.mrf.mxu0 }
 0x195   : > { %v1955_v17 = vpop.f32.mrf.mxu0 }
 0x196   : > { %v1956_v19 = vadd.f32 %v1955_v17, %v1954_v16 }
 0x198   : > { %v712_v20 = vpack.c.bf16 %v1956_v19, %v1953_v18 }
 0x19a   : > { %2002 = vmatmul.mubr.bf16.gmra.mxu1 %v712_v20  ;;  %v2476_v20 = vshrl.u32 %v301_v50, 7 }
 0x19b   : > { %1065 = vmatprep.mubr.bf16.mxu1 %v2188_v0 }
 0x19c   : > { %v925_v21 = vsub.s32 0, %v2476_v20  ;;  %v929_v22 = vsub.s32 1, %v2476_v20 }
 0x22a   : > { %v1991_v23 = vpop.f32.mrf.mxu1 }
 0x22b   : > { %v827_v34 = vadd.f32 %v1991_v23, %v1850_v25  ;;  %v921_v23 = vld [vmem:[%s2940_s6] sm:$0x3] }
 0x22c   : > { %v818_v24 = vpop.f32.mrf.mxu1 }
 0x22d   : > { %v819_v27 = vadd.f32 %v1850_v25, %v818_v24  ;;  %v883_v37 = vmax.f32 %v827_v34, 0.0  ;;  %v2483_v24 = vrot.slane %v921_v23, %v925_v21 }
 0x22e   : > { %v1992_v26 = vpop.f32.mrf.mxu1 }
 0x22f   : > { %v881_v30 = vmax.f32 %v819_v27, 0.0  ;;  %v830_v32 = vadd.f32 %v1992_v26, %v1850_v25 }
 0x230   : > { %v821_v28 = vpop.f32.mrf.mxu1 }
 0x231   : > { %v822_v29 = vadd.f32 %v1850_v25, %v821_v28  ;;  %v884_v35 = vmax.f32 %v830_v32, 0.0 }
 0x233   : > { %v882_v31 = vmax.f32 %v822_v29, 0.0  ;;  %v898_v39 = vpack.c.bf16 %v884_v35, %v883_v37 }
 0x235   : > { %v897_v33 = vpack.c.bf16 %v882_v31, %v881_v30 }
 0x237   : > { %1046 = vmatmul.mubr.bf16.vlgmr.msra.gmra.mxu0 %v897_v33 }
 0x238   : > { %1055 = vmatprep.mubr.bf16.mxu0 %v2188_v0 }
 0x23a   : > { %v1995_v36 = vpop.f32.mrf.mxu1 }
 0x23b   : > { %v843_v48 = vadd.f32 %v1995_v36, %v1850_v25 }
 0x23c   : > { %v834_v38 = vpop.f32.mrf.mxu1 }
 0x23d   : > { %v835_v41 = vadd.f32 %v1850_v25, %v834_v38  ;;  %v887_v53 = vmax.f32 %v843_v48, 0.0 }
 0x23e   : > { %v1996_v40 = vpop.f32.mrf.mxu1 }
 0x23f   : > { %1056 = vmatmul.mubr.bf16.gmra.mxu0 %v898_v39  ;;  %v885_v44 = vmax.f32 %v835_v41, 0.0  ;;  %v846_v46 = vadd.f32 %v1996_v40, %v1850_v25 }
 0x240   : > { %v837_v42 = vpop.f32.mrf.mxu1 }
 0x241   : > { %v838_v43 = vadd.f32 %v1850_v25, %v837_v42  ;;  %v888_v49 = vmax.f32 %v846_v46, 0.0 }
 0x243   : > { %v886_v45 = vmax.f32 %v838_v43, 0.0  ;;  %v900_v56 = vpack.c.bf16 %v888_v49, %v887_v53 }
 0x245   : > { %v899_v47 = vpack.c.bf16 %v886_v45, %v885_v44 }
 0x247   : > { %1066 = vmatmul.mubr.bf16.vlgmr.msra.gmra.mxu1 %v899_v47 }
 0x248   : > { %1075 = vmatprep.mubr.bf16.mxu1 %v2188_v0 }
 0x24a   : > { %v1999_v52 = vpop.f32.mrf.mxu1 }
 0x24b   : > { %v859_v2 = vadd.f32 %v1999_v52, %v1850_v25 }
 0x24c   : > { %v850_v55 = vpop.f32.mrf.mxu1 }
 0x24d   : > { %v851_v58 = vadd.f32 %v1850_v25, %v850_v55  ;;  %v891_v5 = vmax.f32 %v859_v2, 0.0  ;;  %v1379_v55 = vld [vmem:[%s2323_s27 + $0x68] sm:$0xff] }
 0x24e   : > { %v2000_v57 = vpop.f32.mrf.mxu1 }
 0x24f   : > { %1076 = vmatmul.mubr.bf16.gmra.mxu1 %v900_v56  ;;  %v889_v61 = vmax.f32 %v851_v58, 0.0  ;;  %v862_v63 = vadd.f32 %v2000_v57, %v1850_v25 }
 0x250   : > { %v853_v59 = vpop.f32.mrf.mxu1  ;;  %1085 = vmatprep.mubr.bf16.mxu1 %v2188_v0 }
 0x251   : > { %v854_v60 = vadd.f32 %v1850_v25, %v853_v59  ;;  %v892_v3 = vmax.f32 %v862_v63, 0.0 }
 0x253   : > { %v890_v62 = vmax.f32 %v854_v60, 0.0  ;;  %v902_v7 = vpack.c.bf16 %v892_v3, %v891_v5 }
 0x255   : > { %v901_v1 = vpack.c.bf16 %v890_v62, %v889_v61 }
 0x257   : > { %1086 = vmatmul.mubr.bf16.gmra.mxu1 %v901_v1 }
 0x258   : > { %1095 = vmatprep.mubr.bf16.mxu1 %v2188_v0 }
 0x25a   : > { %v2003_v4 = vpop.f32.mrf.mxu1 }
 0x25b   : > { %v875_v16 = vadd.f32 %v2003_v4, %v1850_v25 }
 0x25c   : > { %v866_v6 = vpop.f32.mrf.mxu1 }
 0x25d   : > { %v867_v9 = vadd.f32 %v1850_v25, %v866_v6  ;;  %v895_v18 = vmax.f32 %v875_v16, 0.0 }
 0x25e   : > { %v2004_v8 = vpop.f32.mrf.mxu1 }
 0x25f   : > { %1096 = vmatmul.mubr.bf16.gmra.mxu1 %v902_v7  ;;  %v893_v12 = vmax.f32 %v867_v9, 0.0  ;;  %v878_v14 = vadd.f32 %v2004_v8, %v1850_v25 }
 0x260   : > { %v869_v10 = vpop.f32.mrf.mxu1  ;;  %1105 = vmatprep.mubr.bf16.mxu1 %v2188_v0 }
 0x261   : > { %v870_v11 = vadd.f32 %v1850_v25, %v869_v10  ;;  %v896_v17 = vmax.f32 %v878_v14, 0.0  ;;  %v2485_v25 = vrot.slane %v921_v23, %v929_v22 }
 0x263   : > { %v894_v13 = vmax.f32 %v870_v11, 0.0  ;;  %v904_v19 = vpack.c.bf16 %v896_v17, %v895_v18 }
 0x265   : > { %v903_v15 = vpack.c.bf16 %v894_v13, %v893_v12 }
 0x267   : > { %1106 = vmatmul.mubr.bf16.gmra.mxu1 %v903_v15 }
 0x268   : > { %1115 = vmatprep.mubr.bf16.mxu1 %v2188_v0 }
 0x26f   : > { %1116 = vmatmul.mubr.bf16.gmra.mxu1 %v904_v19 }
 0x2f7   : > { %v1047_v0 = vpop.f32.mrf.mxu0 }
 0x2f8   : > { %v2488_v27 = vadd.f32 %v1047_v0, %v2483_v24 }
 0x2f9   : > { %v1049_v26 = vpop.f32.mrf.mxu0 }
 0x2fa   : > { %v2491_v50 = vadd.f32 %v1049_v26, %v2485_v25 }
 0x2fb   : > { %v1051_v28 = vpop.f32.mrf.mxu0 }
 0x2fc   : > { %v1126_v29 = vmax.f32 %v2488_v27, %v2491_v50  ;;  %v2496_v31 = vadd.f32 %v1051_v28, %v2483_v24 }
 0x2fd   : > { %v1053_v30 = vpop.f32.mrf.mxu0 }
 0x2fe   : > { %v2499_v32 = vadd.f32 %v1053_v30, %v2485_v25  ;;  %1127 = vmax.xlane.f32.xlu0 %v1126_v29 }
 0x2ff   : > { %v1057_v33 = vpop.f32.mrf.mxu0 }
 0x300   : > { %v1129_v34 = vmax.f32 %v2496_v31, %v2499_v32  ;;  %v2504_v36 = vadd.f32 %v1057_v33, %v2483_v24 }
 0x301   : > { %v1059_v35 = vpop.f32.mrf.mxu0 }
 0x302   : > { %v2507_v37 = vadd.f32 %v1059_v35, %v2485_v25  ;;  %1130 = vmax.xlane.f32.xlu1 %v1129_v34 }
 0x303   : > { %v1061_v38 = vpop.f32.mrf.mxu0 }
 0x304   : > { %v1132_v39 = vmax.f32 %v2504_v36, %v2507_v37  ;;  %v2512_v41 = vadd.f32 %v1061_v38, %v2483_v24 }
 0x305   : > { %v1063_v40 = vpop.f32.mrf.mxu0 }
 0x306   : > { %v2515_v42 = vadd.f32 %v1063_v40, %v2485_v25  ;;  %1133 = vmax.xlane.f32.xlu0 %v1132_v39 }
 0x307   : > { %v1067_v43 = vpop.f32.mrf.mxu1 }
 0x308   : > { %v1135_v44 = vmax.f32 %v2512_v41, %v2515_v42  ;;  %v2564_v0 = vadd.f32 %v1067_v43, %v2483_v24 }
 0x309   : > { %v1069_v45 = vpop.f32.mrf.mxu1 }
 0x30a   : > { %1136 = vmax.xlane.f32.xlu0 %v1135_v44  ;;  %v2561_v22 = vadd.f32 %v1069_v45, %v2485_v25 }
 0x30b   : > { %v1071_v46 = vpop.f32.mrf.mxu1 }
 0x30c   : > { %v2520_v48 = vadd.f32 %v1071_v46, %v2483_v24  ;;  %v1138_v30 = vmax.f32 %v2564_v0, %v2561_v22 }
 0x30d   : > { %v1073_v47 = vpop.f32.mrf.mxu1 }
 0x30e   : > { %v2523_v49 = vadd.f32 %v1073_v47, %v2485_v25 }
 0x30f   : > { %v1077_v52 = vpop.f32.mrf.mxu1 }
 0x310   : > { %v1141_v53 = vmax.f32 %v2520_v48, %v2523_v49  ;;  %v2578_v35 = vadd.f32 %v1077_v52, %v2483_v24 }
 0x311   : > { %v1079_v56 = vpop.f32.mrf.mxu1 }
 0x312   : > { %1142 = vmax.xlane.f32.xlu0 %v1141_v53  ;;  %v2567_v28 = vadd.f32 %v1079_v56, %v2485_v25 }
 0x313   : > { %1422 = vperm.xlu1 %2035, %v1379_v55   ;;  %v1081_v57 = vpop.f32.mrf.mxu1 }
 0x314   : > { %v2529_v59 = vadd.f32 %v1081_v57, %v2483_v24  ;;  %v1144_v40 = vmax.f32 %v2578_v35, %v2567_v28 }
 0x315   : > { %v1083_v58 = vpop.f32.mrf.mxu1 }
 0x316   : > { %v2532_v60 = vadd.f32 %v1083_v58, %v2485_v25 }
 0x317   : > { %v1087_v61 = vpop.f32.mrf.mxu1 }
 0x318   : > { %v1147_v62 = vmax.f32 %v2529_v59, %v2532_v60  ;;  %v2588_v43 = vadd.f32 %v1087_v61, %v2483_v24  ;;  %v1380_v61 = vld [vmem:[%s2323_s27 + $0x70] sm:$0xff] }
 0x319   : > { %v1089_v63 = vpop.f32.mrf.mxu1 }
 0x31a   : > { %1148 = vmax.xlane.f32.xlu0 %v1147_v62  ;;  %v2583_v39 = vadd.f32 %v1089_v63, %v2485_v25  ;;  %v1381_v62 = vld [vmem:[%s2323_s27 + $0x78] sm:$0xff]  ;;  %v1384_v63 = vpop.permute.xlu1 %1383  ;;  %s1769_s27 = sshll.u32 %s2237_s25, 7  ;;  %s2963_s25 = smov (!%p296_p4, %s2237_s25), 1 }
 0x31b   : > { %v1091_v1 = vpop.f32.mrf.mxu1  ;;  %vm1431_vm0 = vcmp.eq.s32.totalorder %v1384_v63, %v2354_v54  ;;  %vm1430_vm1 = vcmp.eq.s32.totalorder %v1384_v63, %v2351_v51  ;;  %s298_s18 = scalar_lea.vmem %s2941_s7, %s2963_s25 }
 0x31c   : > { %v2537_v3 = vadd.f32 %v1091_v1, %v2483_v24  ;;  %v1150_v45 = vmax.f32 %v2588_v43, %v2583_v39  ;;  %v1387_v1 = vpop.permute.xlu0 %1386 }
 0x31d   : > { %v1093_v2 = vpop.f32.mrf.mxu1  ;;  %vm1433_vm2 = vcmp.eq.s32.totalorder %v1387_v1, %v2354_v54  ;;  %vm1432_vm3 = vcmp.eq.s32.totalorder %v1387_v1, %v2351_v51 }
 0x31e   : > { %v2540_v4 = vadd.f32 %v1093_v2, %v2485_v25  ;;  %v1463_v2 = vsel %vm1431_vm0, %v2491_v50, 0.0 }
 0x31f   : > { %v1097_v5 = vpop.f32.mrf.mxu1 }
 0x320   : > { %v1153_v6 = vmax.f32 %v2537_v3, %v2540_v4  ;;  %v2596_v46 = vadd.f32 %v1097_v5, %v2483_v24  ;;  %v1462_v5 = vsel %vm1430_vm1, %v2488_v27, 0.0 }
 0x321   : > { %v1099_v7 = vpop.f32.mrf.mxu1 }
 0x322   : > { %1154 = vmax.xlane.f32.xlu0 %v1153_v6  ;;  %v2591_v44 = vadd.f32 %v1099_v7, %v2485_v25  ;;  %v1494_v6 = vadd.f32 %v1463_v2, %v1462_v5 }
 0x323   : > { %v1101_v8 = vpop.f32.mrf.mxu1 }
 0x324   : > { %v2545_v10 = vadd.f32 %v1101_v8, %v2483_v24  ;;  %v1156_v52 = vmax.f32 %v2596_v46, %v2591_v44 }
 0x325   : > { %v1103_v9 = vpop.f32.mrf.mxu1 }
 0x326   : > { %v2548_v11 = vadd.f32 %v1103_v9, %v2485_v25 }
 0x327   : > { %v1107_v12 = vpop.f32.mrf.mxu1 }
 0x328   : > { %v1159_v13 = vmax.f32 %v2545_v10, %v2548_v11  ;;  %v2604_v53 = vadd.f32 %v1107_v12, %v2483_v24 }
 0x329   : > { %v1109_v14 = vpop.f32.mrf.mxu1 }
 0x32a   : > { %1160 = vmax.xlane.f32.xlu0 %v1159_v13  ;;  %v2599_v47 = vadd.f32 %v1109_v14, %v2485_v25  ;;  %v1465_v14 = vsel %vm1433_vm2, %v2499_v32, 0.0 }
 0x32b   : > { %v1111_v15 = vpop.f32.mrf.mxu1 }
 0x32c   : > { %v2553_v17 = vadd.f32 %v1111_v15, %v2483_v24  ;;  %v1162_v56 = vmax.f32 %v2604_v53, %v2599_v47 }
 0x32d   : > { %v1113_v16 = vpop.f32.mrf.mxu1 }
 0x32e   : > { %v2556_v18 = vadd.f32 %v1113_v16, %v2485_v25  ;;  %v1464_v16 = vsel %vm1432_vm3, %v2496_v31, 0.0 }
 0x32f   : > { %v1117_v19 = vpop.f32.mrf.mxu1 }
 0x330   : > { %v1165_v21 = vmax.f32 %v2553_v17, %v2556_v18  ;;  %v2612_v57 = vadd.f32 %v1117_v19, %v2483_v24  ;;  %v1497_v19 = vadd.f32 %v1465_v14, %v1464_v16 }
 0x331   : > { %v1119_v23 = vpop.f32.mrf.mxu1 }
 0x332   : > { %1166 = vmax.xlane.f32.xlu0 %v1165_v21  ;;  %v2607_v55 = vadd.f32 %v1119_v23, %v2485_v25 }
 0x333   : > { %v1121_v26 = vpop.f32.mrf.mxu1 }
 0x334   : > { %v2572_v33 = vadd.f32 %v1121_v26, %v2483_v24  ;;  %v1168_v58 = vmax.f32 %v2612_v57, %v2607_v55  ;;  %v2621_v24 = vpop.permute.xlu0 %1395 }
 0x335   : > { %v1123_v29 = vpop.f32.mrf.mxu1  ;;  %vm1439_vm8 = vcmp.eq.s32.totalorder %v2621_v24, %v2354_v54  ;;  %vm1438_vm9 = vcmp.eq.s32.totalorder %v2621_v24, %v2351_v51 }
 0x336   : > { %v2575_v34 = vadd.f32 %v1123_v29, %v2485_v25  ;;  %v1390_v25 = vpop.permute.xlu1 %1389 }
 0x337   : > { %1139 = vmax.xlane.f32.xlu1 %v1138_v30  ;;  %vm1435_vm4 = vcmp.eq.s32.totalorder %v1390_v25, %v2354_v54  ;;  %vm1434_vm5 = vcmp.eq.s32.totalorder %v1390_v25, %v2351_v51 }
 0x338   : > { %v1171_v38 = vmax.f32 %v2572_v33, %v2575_v34  ;;  %v2624_v8 = vpop.permute.xlu0 %1401  ;;  %v1467_v21 = vsel %vm1435_vm4, %v2507_v37, 0.0  ;;  %v1466_v26 = vsel %vm1434_vm5, %v2504_v36, 0.0 }
 0x339   : > { %v1500_v29 = vadd.f32 %v1467_v21, %v1466_v26  ;;  %vm1443_vm12 = vcmp.eq.s32.totalorder %v2624_v8, %v2354_v54  ;;  %vm1442_vm13 = vcmp.eq.s32.totalorder %v2624_v8, %v2351_v51 }
 0x33a   : > { %1172 = vmax.xlane.f32.xlu0 %v1171_v38  ;;  %v1393_v7 = vpop.permute.xlu1 %1392 }
 0x33b   : > { %1145 = vmax.xlane.f32.xlu1 %v1144_v40  ;;  %vm1437_vm6 = vcmp.eq.s32.totalorder %v1393_v7, %v2354_v54  ;;  %vm1436_vm7 = vcmp.eq.s32.totalorder %v1393_v7, %v2351_v51 }
 0x33c   : > { %v2628_v12 = vpop.permute.xlu0 %1407  ;;  %v1469_v38 = vsel %vm1437_vm6, %v2515_v42, 0.0  ;;  %v1468_v40 = vsel %vm1436_vm7, %v2512_v41, 0.0 }
 0x33d   : > { %vm1447_vm14 = vcmp.eq.s32.totalorder %v2628_v12, %v2354_v54  ;;  %vm1446_vm15 = vcmp.eq.s32.totalorder %v2628_v12, %v2351_v51 }
 0x33e   : > { %v2626_v9 = vpop.permute.xlu1 %1398 }
 0x33f   : > { %1151 = vmax.xlane.f32.xlu1 %v1150_v45  ;;  %v1503_v45 = vadd.f32 %v1469_v38, %v1468_v40  ;;  %vm1441_vm10 = vcmp.eq.s32.totalorder %v2626_v9, %v2354_v54  ;;  %vm1440_vm11 = vcmp.eq.s32.totalorder %v2626_v9, %v2351_v51  ;;  %v1474_v9 = vsel %vm1442_vm13, %v2578_v35, 0.0 }
 0x340   : > { %v2635_v15 = vpop.permute.xlu0 %1413  ;;  %v1472_v24 = vsel %vm1440_vm11, %v2520_v48, 0.0 }
 0x341   : > { %vm1451_vm1 = vcmp.eq.s32.totalorder %v2635_v15, %v2354_v54  ;;  %vm1450_vm3 = vcmp.eq.s32.totalorder %v2635_v15, %v2351_v51 }
 0x342   : > { %v2631_v13 = vpop.permute.xlu1 %1404 }
 0x343   : > { %1157 = vmax.xlane.f32.xlu1 %v1156_v52  ;;  %vm1445_vm0 = vcmp.eq.s32.totalorder %v2631_v13, %v2354_v54  ;;  %vm1444_vm2 = vcmp.eq.s32.totalorder %v2631_v13, %v2351_v51 }
 0x344   : > { %v2645_v30 = vpop.permute.xlu0 %1419  ;;  %v1476_v12 = vsel %vm1444_vm2, %v2529_v59, 0.0 }
 0x345   : > { %vm1455_vm5 = vcmp.eq.s32.totalorder %v2645_v30, %v2354_v54  ;;  %vm1454_vm7 = vcmp.eq.s32.totalorder %v2645_v30, %v2351_v51 }
 0x346   : > { %v2641_v23 = vpop.permute.xlu1 %1410 }
 0x347   : > { %1163 = vmax.xlane.f32.xlu1 %v1162_v56  ;;  %vm1449_vm4 = vcmp.eq.s32.totalorder %v2641_v23, %v2354_v54  ;;  %vm1448_vm6 = vcmp.eq.s32.totalorder %v2641_v23, %v2351_v51 }
 0x348   : > { %v1481_v13 = vsel %vm1449_vm4, %v2540_v4, 0.0 }
 0x34a   : > { %v2650_v52 = vpop.permute.xlu1 %1416 }
 0x34b   : > { %1169 = vmax.xlane.f32.xlu1 %v1168_v58  ;;  %vm1452_vm11 = vcmp.eq.s32.totalorder %v2650_v52, %v2351_v51 }
 0x350   : > { %1425 = vperm.xlu0 %2034, %v1380_v61  }
 0x35c   : > { %1428 = vperm.xlu1 %2035, %v1381_v62  }
 0x36f   : > { %1495 = vadd.xlane.f32.xlu0 %v1494_v6 }
 0x380   : > { %1498 = vadd.xlane.f32.xlu1 %v1497_v19 }
 0x384   : > { %1501 = vadd.xlane.f32.xlu1 %v1500_v29 }
 0x387   : > { %v2652_v56 = vpop.xlane.xlu0 %1127 }
 0x388   : > { %v1174_v58 = vsub.f32 %v2488_v27, %v2652_v56  ;;  %v1175_v61 = vsub.f32 %v2491_v50, %v2652_v56  ;;  %1504 = vadd.xlane.f32.xlu1 %v1503_v45 }
 0x38a   : > { %v1206_v62 = vmul.f32 1.442695, %v1174_v58  ;;  %v1208_v63 = vmul.f32 1.442695, %v1175_v61 }
 0x38b   : > { %v2658_v1 = vpop.xlane.xlu1 %1130 }
 0x38c   : > { %2084 = vpow2.f32 %v1206_v62  ;;  %v1176_v25 = vsub.f32 %v2496_v31, %v2658_v1  ;;  %v1177_v2 = vsub.f32 %v2499_v32, %v2658_v1 }
 0x38d   : > { %2086 = vpow2.f32 %v1208_v63 }
 0x38e   : > { %v1210_v5 = vmul.f32 1.442695, %v1176_v25  ;;  %v1212_v6 = vmul.f32 1.442695, %v1177_v2 }
 0x38f   : > { %v2664_v7 = vpop.xlane.xlu0 %1133 }
 0x390   : > { %2088 = vpow2.f32 %v1210_v5  ;;  %v1178_v27 = vsub.f32 %v2504_v36, %v2664_v7  ;;  %v1179_v50 = vsub.f32 %v2507_v37, %v2664_v7 }
 0x391   : > { %2090 = vpow2.f32 %v1212_v6 }
 0x392   : > { %v1214_v14 = vmul.f32 1.442695, %v1178_v27  ;;  %v1216_v16 = vmul.f32 1.442695, %v1179_v50 }
 0x393   : > { %v2670_v19 = vpop.xlane.xlu0 %1136 }
 0x394   : > { %2092 = vpow2.f32 %v1214_v14  ;;  %v1180_v31 = vsub.f32 %v2512_v41, %v2670_v19  ;;  %v1181_v32 = vsub.f32 %v2515_v42, %v2670_v19 }
 0x395   : > { %2094 = vpow2.f32 %v1216_v16 }
 0x396   : > { %v1218_v21 = vmul.f32 1.442695, %v1180_v31  ;;  %v1220_v26 = vmul.f32 1.442695, %v1181_v32 }
 0x398   : > { %2096 = vpow2.f32 %v1218_v21 }
 0x399   : > { %v2085_v36 = vpop.eup %2084  ;;  %2098 = vpow2.f32 %v1220_v26 }
 0x39a   : > { %v2087_v29 = vpop.eup %2086 }
 0x39b   : > { %v2676_v38 = vpop.xlane.xlu0 %1142  ;;  %v1270_v37 = vadd.f32 %v2087_v29, %v2085_v36 }
 0x39c   : > { %v1184_v40 = vsub.f32 %v2520_v48, %v2676_v38  ;;  %v1185_v45 = vsub.f32 %v2523_v49, %v2676_v38 }
 0x39d   : > { %v2089_v41 = vpop.eup %2088  ;;  %1271 = vadd.xlane.f32.xlu0 %v1270_v37 }
 0x39e   : > { %v2091_v58 = vpop.eup %2090  ;;  %v1226_v42 = vmul.f32 1.442695, %v1184_v40  ;;  %v1228_v61 = vmul.f32 1.442695, %v1185_v45 }
 0x39f   : > { %v1273_v62 = vadd.f32 %v2091_v58, %v2089_v41 }
 0x3a0   : > { %2100 = vpow2.f32 %v1226_v42 }
 0x3a1   : > { %v2093_v63 = vpop.eup %2092  ;;  %2102 = vpow2.f32 %v1228_v61  ;;  %1274 = vadd.xlane.f32.xlu1 %v1273_v62 }
 0x3a2   : > { %v2095_v25 = vpop.eup %2094 }
 0x3a3   : > { %v2682_v2 = vpop.xlane.xlu0 %1148  ;;  %v1276_v5 = vadd.f32 %v2095_v25, %v2093_v63 }
 0x3a4   : > { %v1188_v6 = vsub.f32 %v2529_v59, %v2682_v2  ;;  %v1189_v27 = vsub.f32 %v2532_v60, %v2682_v2  ;;  %v1480_v59 = vsel %vm1448_vm6, %v2537_v3, 0.0  ;;  %vm1656_vm6 = vcmask 7168  }
 0x3a5   : > { %v2097_v50 = vpop.eup %2096  ;;  %1277 = vadd.xlane.f32.xlu0 %v1276_v5 }
 0x3a6   : > { %v2099_v14 = vpop.eup %2098  ;;  %v1234_v16 = vmul.f32 1.442695, %v1188_v6  ;;  %v1236_v31 = vmul.f32 1.442695, %v1189_v27  ;;  %v2700_v27 = vpop.permute.xlu1 %1422 }
 0x3a7   : > { %v1279_v32 = vadd.f32 %v2099_v14, %v2097_v50  ;;  %vm1457_vm13 = vcmp.eq.s32.totalorder %v2700_v27, %v2354_v54 }
 0x3a8   : > { %2104 = vpow2.f32 %v1234_v16 }
 0x3a9   : > { %2106 = vpow2.f32 %v1236_v31  ;;  %1280 = vadd.xlane.f32.xlu0 %v1279_v32 }
 0x3ab   : > { %v2688_v21 = vpop.xlane.xlu0 %1154 }
 0x3ac   : > { %2948 = vst [vmem:[#allocation2_spill] sm:$0xff] %v2688_v21  ;;  %v1192_v26 = vsub.f32 %v2537_v3, %v2688_v21  ;;  %v1193_v36 = vsub.f32 %v2540_v4, %v2688_v21  ;;  %v1486_v4 = vsel %vm1454_vm7, %v2604_v53, 0.0 }
 0x3ad   : > { %v2101_v29 = vpop.eup %2100 }
 0x3ae   : > { %v2103_v37 = vpop.eup %2102  ;;  %v1242_v40 = vmul.f32 1.442695, %v1192_v26  ;;  %v1244_v45 = vmul.f32 1.442695, %v1193_v36 }
 0x3af   : > { %v1285_v41 = vadd.f32 %v2103_v37, %v2101_v29 }
 0x3b0   : > { %2108 = vpow2.f32 %v1242_v40 }
 0x3b1   : > { %2110 = vpow2.f32 %v1244_v45  ;;  %1286 = vadd.xlane.f32.xlu0 %v1285_v41 }
 0x3b3   : > { %v2694_v58 = vpop.xlane.xlu0 %1160 }
 0x3b4   : > { %2949 = vst [vmem:[#allocation3_spill] sm:$0xff] %v2694_v58  ;;  %v1196_v42 = vsub.f32 %v2545_v10, %v2694_v58  ;;  %v1197_v61 = vsub.f32 %v2548_v11, %v2694_v58 }
 0x3b5   : > { %v2105_v62 = vpop.eup %2104 }
 0x3b6   : > { %v2107_v63 = vpop.eup %2106  ;;  %v1250_v25 = vmul.f32 1.442695, %v1196_v42  ;;  %v1252_v5 = vmul.f32 1.442695, %v1197_v61 }
 0x3b7   : > { %v1291_v6 = vadd.f32 %v2107_v63, %v2105_v62 }
 0x3b8   : > { %2112 = vpow2.f32 %v1250_v25 }
 0x3b9   : > { %2114 = vpow2.f32 %v1252_v5  ;;  %1292 = vadd.xlane.f32.xlu0 %v1291_v6 }
 0x3bd   : > { %v2109_v50 = vpop.eup %2108 }
 0x3be   : > { %v2111_v14 = vpop.eup %2110 }
 0x3bf   : > { %v1297_v16 = vadd.f32 %v2111_v14, %v2109_v50 }
 0x3c0   : > { %v2702_v31 = vpop.xlane.xlu1 %1139 }
 0x3c1   : > { %v1182_v32 = vsub.f32 %v2564_v0, %v2702_v31  ;;  %v1183_v26 = vsub.f32 %v2561_v22, %v2702_v31  ;;  %1298 = vadd.xlane.f32.xlu0 %v1297_v16  ;;  %v2720_v16 = vpop.xlane.xlu0 %1166 }
 0x3c2   : > { %2950 = vst [vmem:[#allocation4_spill] sm:$0xff] %v2720_v16 }
 0x3c3   : > { %v1222_v36 = vmul.f32 1.442695, %v1182_v32  ;;  %v1224_v29 = vmul.f32 1.442695, %v1183_v26 }
 0x3c4   : > { %v2708_v37 = vpop.xlane.xlu1 %1145 }
 0x3c5   : > { %v2113_v40 = vpop.eup %2112  ;;  %2116 = vpow2.f32 %v1222_v36  ;;  %v1186_v45 = vsub.f32 %v2578_v35, %v2708_v37  ;;  %v1187_v41 = vsub.f32 %v2567_v28, %v2708_v37 }
 0x3c6   : > { %v2115_v42 = vpop.eup %2114  ;;  %2118 = vpow2.f32 %v1224_v29  ;;  %v1200_v29 = vsub.f32 %v2553_v17, %v2720_v16 }
 0x3c7   : > { %v1230_v61 = vmul.f32 1.442695, %v1186_v45  ;;  %v1232_v62 = vmul.f32 1.442695, %v1187_v41  ;;  %v1303_v63 = vadd.f32 %v2115_v42, %v2113_v40  ;;  %v1201_v41 = vsub.f32 %v2556_v18, %v2720_v16 }
 0x3c8   : > { %v2714_v25 = vpop.xlane.xlu1 %1151 }
 0x3c9   : > { %v1190_v5 = vsub.f32 %v2588_v43, %v2714_v25  ;;  %v1191_v6 = vsub.f32 %v2583_v39, %v2714_v25  ;;  %1304 = vadd.xlane.f32.xlu0 %v1303_v63  ;;  %2120 = vpow2.f32 %v1230_v61 }
 0x3ca   : > { %2122 = vpow2.f32 %v1232_v62 }
 0x3cb   : > { %v1238_v50 = vmul.f32 1.442695, %v1190_v5  ;;  %v1240_v14 = vmul.f32 1.442695, %v1191_v6  ;;  %v1258_v6 = vmul.f32 1.442695, %v1200_v29 }
 0x3cc   : > { %v2722_v32 = vpop.xlane.xlu1 %1157 }
 0x3cd   : > { %2951 = vst [vmem:[#allocation5_spill] sm:$0xff] %v2722_v32  ;;  %2124 = vpow2.f32 %v1238_v50  ;;  %v1194_v26 = vsub.f32 %v2596_v46, %v2722_v32  ;;  %v1195_v36 = vsub.f32 %v2591_v44, %v2722_v32 }
 0x3ce   : > { %2126 = vpow2.f32 %v1240_v14 }
 0x3cf   : > { %v1246_v40 = vmul.f32 1.442695, %v1194_v26  ;;  %v1248_v45 = vmul.f32 1.442695, %v1195_v36  ;;  %v1260_v26 = vmul.f32 1.442695, %v1201_v41  ;;  %v2738_v36 = vpop.xlane.xlu0 %1172 }
 0x3d0   : > { %v2732_v42 = vpop.xlane.xlu1 %1163  ;;  %v1204_v29 = vsub.f32 %v2572_v33, %v2738_v36 }
 0x3d1   : > { %2952 = vst [vmem:[#allocation6_spill] sm:$0xff] %v2732_v42  ;;  %2128 = vpow2.f32 %v1246_v40  ;;  %v1198_v61 = vsub.f32 %v2604_v53, %v2732_v42  ;;  %v1199_v62 = vsub.f32 %v2599_v47, %v2732_v42  ;;  %v1484_v53 = vsel %vm1452_vm11, %v2545_v10, 0.0 }
 0x3d2   : > { %v2117_v63 = vpop.eup %2116  ;;  %2130 = vpow2.f32 %v1248_v45  ;;  %v1266_v32 = vmul.f32 1.442695, %v1204_v29 }
 0x3d3   : > { %v2119_v5 = vpop.eup %2118  ;;  %v1254_v50 = vmul.f32 1.442695, %v1198_v61  ;;  %v1256_v14 = vmul.f32 1.442695, %v1199_v62  ;;  %v1205_v62 = vsub.f32 %v2575_v34, %v2738_v36 }
 0x3d4   : > { %v2740_v58 = vpop.xlane.xlu1 %1169  ;;  %v1282_v16 = vadd.f32 %v2119_v5, %v2117_v63 }
 0x3d5   : > { %2953 = vst [vmem:[#allocation7_spill] sm:$0xff] %v2740_v58  ;;  %2132 = vpow2.f32 %v1254_v50  ;;  %v1202_v40 = vsub.f32 %v2612_v57, %v2740_v58  ;;  %v1203_v21 = vsub.f32 %v2607_v55, %v2740_v58 }
 0x3d6   : > { %2134 = vpow2.f32 %v1256_v14  ;;  %1283 = vadd.xlane.f32.xlu1 %v1282_v16  ;;  %v2121_v45 = vpop.eup %2120  ;;  %v1268_v14 = vmul.f32 1.442695, %v1205_v62 }
 0x3d7   : > { %2136 = vpow2.f32 %v1258_v6  ;;  %v1262_v41 = vmul.f32 1.442695, %v1202_v40  ;;  %v2123_v61 = vpop.eup %2122  ;;  %v1264_v63 = vmul.f32 1.442695, %v1203_v21  ;;  %v1471_v21 = vsel %vm1439_vm8, %v2561_v22, 0.0 }
 0x3d8   : > { %2138 = vpow2.f32 %v1260_v26  ;;  %v1288_v5 = vadd.f32 %v2123_v61, %v2121_v45  ;;  %v1429_v30 = vpop.permute.xlu1 %1428 }
 0x3d9   : > { %2140 = vpow2.f32 %v1262_v41 }
 0x3da   : > { %v2125_v50 = vpop.eup %2124  ;;  %1289 = vadd.xlane.f32.xlu1 %v1288_v5  ;;  %2142 = vpow2.f32 %v1264_v63  ;;  %v1475_v5 = vsel %vm1443_vm12, %v2567_v28, 0.0  ;;  %v1478_v28 = vsel %vm1446_vm15, %v2588_v43, 0.0  ;;  %v1426_v43 = vpop.permute.xlu0 %1425  ;;  %vm1456_vm12 = vcmp.eq.s32.totalorder %v2700_v27, %v2351_v51 }
 0x3db   : > { %v2127_v42 = vpop.eup %2126  ;;  %2144 = vpow2.f32 %v1266_v32  ;;  %v1473_v32 = vsel %vm1441_vm10, %v2523_v49, 0.0  ;;  %v1512_v48 = vadd.f32 %v1475_v5, %v1474_v9  ;;  %vm1458_vm8 = vcmp.eq.s32.totalorder %v1426_v43, %v2351_v51 }
 0x3dc   : > { %v1294_v16 = vadd.f32 %v2127_v42, %v2125_v50  ;;  %2146 = vpow2.f32 %v1268_v14  ;;  %v1470_v42 = vsel %vm1438_vm9, %v2564_v0, 0.0  ;;  %v1509_v0 = vadd.f32 %v1473_v32, %v1472_v24 }
 0x3dd   : > { %vm1459_vm9 = vcmp.eq.s32.totalorder %v1426_v43, %v2354_v54  ;;  %vm1453_vm10 = vcmp.eq.s32.totalorder %v2650_v52, %v2354_v54  ;;  %v1490_v3 = vsel %vm1458_vm8, %v2612_v57, 0.0  ;;  %vm1461_vm15 = vcmp.eq.s32.totalorder %v1429_v30, %v2354_v54 }
 0x3de   : > { %v2129_v6 = vpop.eup %2128  ;;  %1295 = vadd.xlane.f32.xlu1 %v1294_v16  ;;  %v1479_v16 = vsel %vm1447_vm14, %v2583_v39, 0.0  ;;  %v1483_v39 = vsel %vm1451_vm1, %v2591_v44, 0.0  ;;  %v1487_v44 = vsel %vm1455_vm5, %v2599_v47, 0.0  ;;  %v1485_v15 = vsel %vm1453_vm10, %v2548_v11, 0.0 }
 0x3df   : > { %v2131_v58 = vpop.eup %2130  ;;  %v1518_v35 = vadd.f32 %v1479_v16, %v1478_v28  ;;  %v1530_v47 = vadd.f32 %v1487_v44, %v1486_v4  ;;  %v1491_v23 = vsel %vm1459_vm9, %v2607_v55, 0.0  ;;  %v1489_v11 = vsel %vm1457_vm13, %v2556_v18, 0.0 }
 0x3e0   : > { %v1300_v40 = vadd.f32 %v2131_v58, %v2129_v6  ;;  %v1506_v58 = vadd.f32 %v1471_v21, %v1470_v42  ;;  %v1477_v6 = vsel %vm1445_vm0, %v2532_v60, 0.0  ;;  %v1527_v21 = vadd.f32 %v1485_v15, %v1484_v53 }
 0x3e1   : > { %v1536_v52 = vadd.f32 %v1491_v23, %v1490_v3  ;;  %vm1460_vm14 = vcmp.eq.s32.totalorder %v1429_v30, %v2351_v51  ;;  %v1493_v55 = vsel %vm1461_vm15, %v2575_v34, 0.0  ;;  %v1544_v24 = vadd.s32 8, %v2476_v20 }
 0x3e2   : > { %v2133_v26 = vpop.eup %2132  ;;  %1301 = vadd.xlane.f32.xlu1 %v1300_v40  ;;  %v1482_v40 = vsel %vm1450_vm3, %v2596_v46, 0.0  ;;  %v1521_v46 = vadd.f32 %v1481_v13, %v1480_v59  ;;  %v1492_v57 = vsel %vm1460_vm14, %v2572_v33, 0.0  ;;  %v1546_v16 = vadd.s32 24, %v2476_v20 }
 0x3e3   : > { %v2135_v45 = vpop.eup %2134  ;;  %v1524_v60 = vadd.f32 %v1483_v39, %v1482_v40  ;;  %v1539_v10 = vadd.f32 %v1493_v55, %v1492_v57  ;;  %v1547_v28 = vadd.s32 32, %v2476_v20  ;;  %v1548_v43 = vadd.s32 40, %v2476_v20 }
 0x3e4   : > { %v2137_v29 = vpop.eup %2136  ;;  %v1306_v41 = vadd.f32 %v2135_v45, %v2133_v26  ;;  %v1515_v26 = vadd.f32 %v1477_v6, %v1476_v12  ;;  %v1488_v45 = vsel %vm1456_vm12, %v2553_v17, 0.0  ;;  %v2190_v3 = vmov 0.0  }
 0x3e5   : > { %v2139_v61 = vpop.eup %2138  ;;  %v1533_v27 = vadd.f32 %v1489_v11, %v1488_v45 }
 0x3e6   : > { %1307 = vadd.xlane.f32.xlu0 %v1306_v41  ;;  %1507 = vadd.xlane.f32.xlu1 %v1506_v58  ;;  %v2141_v22 = vpop.eup %2140  ;;  %v1309_v62 = vadd.f32 %v2139_v61, %v2137_v29 }
 0x3e7   : > { %v2143_v63 = vpop.eup %2142 }
 0x3e8   : > { %v2145_v49 = vpop.eup %2144  ;;  %v1312_v50 = vadd.f32 %v2143_v63, %v2141_v22  ;;  %v2827_v22 = vstv %s1769_s27  ;;  %v1545_v63 = vadd.s32 16, %v2476_v20 }
 0x3e9   : > { %v2147_v14 = vpop.eup %2146  ;;  %v1560_v9 = vadd.s32 %v2827_v22, %v2476_v20  ;;  %v1564_v13 = vadd.s32 %v2827_v22, %v1547_v28 }
 0x3ea   : > { %1310 = vadd.xlane.f32.xlu0 %v1309_v62  ;;  %1510 = vadd.xlane.f32.xlu1 %v1509_v0  ;;  %v1315_v8 = vadd.f32 %v2147_v14, %v2145_v49 }
 0x3eb   : > { %vm1576_vm0 = vcmp.lt.s32.totalorder %v1560_v9, 200  ;;  %vm1580_vm4 = vcmp.lt.s32.totalorder %v1564_v13, 200  ;;  %v1553_v9 = vadd.s32 80, %v2476_v20 }
 0x3ec   : > { %v1875_v23 = vsel %vm1576_vm0, 1.0, %v2190_v3 }
 0x3ee   : > { %1313 = vadd.xlane.f32.xlu0 %v1312_v50  ;;  %1513 = vadd.xlane.f32.xlu1 %v1512_v48  ;;  %v1561_v48 = vadd.s32 %v2827_v22, %v1544_v24 }
 0x3f0   : > { %vm1577_vm1 = vcmp.lt.s32.totalorder %v1561_v48, 200  ;;  %v1552_v48 = vadd.s32 72, %v2476_v20 }
 0x3f1   : > { %v1876_v30 = vsel %vm1577_vm1, 1.0, %v2190_v3  ;;  %vm1697_vm1 = vcmp.eq.s32.totalorder %v2351_v51, 0 }
 0x3f2   : > { %1316 = vadd.xlane.f32.xlu0 %v1315_v8  ;;  %1519 = vadd.xlane.f32.xlu1 %v1518_v35  ;;  %v1562_v35 = vadd.s32 %v2827_v22, %v1545_v63 }
 0x3f4   : > { %vm1578_vm2 = vcmp.lt.s32.totalorder %v1562_v35, 200 }
 0x3f6   : > { %1516 = vadd.xlane.f32.xlu0 %v1515_v26  ;;  %1525 = vadd.xlane.f32.xlu1 %v1524_v60  ;;  %v1563_v60 = vadd.s32 %v2827_v22, %v1546_v16 }
 0x3f8   : > { %v2822_v18 = vpop.xlane.xlu0 %1495  ;;  %vm1579_vm3 = vcmp.lt.s32.totalorder %v1563_v60, 200 }
 0x3fa   : > { %1522 = vadd.xlane.f32.xlu0 %v1521_v46  ;;  %1531 = vadd.xlane.f32.xlu1 %v1530_v47  ;;  %v1565_v46 = vadd.s32 %v2827_v22, %v1548_v43  ;;  %v1549_v47 = vadd.s32 48, %v2476_v20 }
 0x3fc   : > { %vm1581_vm5 = vcmp.lt.s32.totalorder %v1565_v46, 200  ;;  %v1566_v55 = vadd.s32 %v2827_v22, %v1549_v47  ;;  %v1569_v46 = vadd.s32 %v2827_v22, %v1552_v48 }
 0x3fe   : > { %1528 = vadd.xlane.f32.xlu0 %v1527_v21  ;;  %1537 = vadd.xlane.f32.xlu1 %v1536_v52  ;;  %vm1582_vm7 = vcmp.lt.s32.totalorder %v1566_v55, 200  ;;  %vm1585_vm12 = vcmp.lt.s32.totalorder %v1569_v46, 200 }
 0x3ff   : > { %v1881_v43 = vsel %vm1582_vm7, 1.0, %v2190_v3 }
 0x402   : > { %1534 = vadd.xlane.f32.xlu0 %v1533_v27 }
 0x406   : > { %1540 = vadd.xlane.f32.xlu0 %v1539_v10 }
 0x409   : > { %v2818_v29 = vpop.xlane.xlu1 %1498 }
 0x40d   : > { %v2820_v17 = vpop.xlane.xlu1 %1501 }
 0x411   : > { %v2824_v41 = vpop.xlane.xlu1 %1504 }
 0x426   : > { %v1272_v42 = vpop.xlane.xlu0 %1271 }
 0x42a   : > { %v1275_v61 = vpop.xlane.xlu1 %1274 }
 0x42b   : > { %2148 = vlog2.f32 %v1275_v61 }
 0x42c   : > { %2150 = vlog2.f32 %v1272_v42 }
 0x42e   : > { %v1278_v54 = vpop.xlane.xlu0 %1277 }
 0x42f   : > { %2152 = vlog2.f32 %v1278_v54 }
 0x432   : > { %v1281_v33 = vpop.xlane.xlu0 %1280 }
 0x433   : > { %2154 = vlog2.f32 %v1281_v33 }
 0x438   : > { %v2149_v32 = vpop.eup %2148 }
 0x439   : > { %v2151_v62 = vpop.eup %2150  ;;  %v1321_v5 = vmul.f32 0.6931472, %v2149_v32 }
 0x43a   : > { %v1287_v34 = vpop.xlane.xlu0 %1286  ;;  %v1319_v8 = vmul.f32 0.6931472, %v2151_v62 }
 0x43b   : > { %2156 = vlog2.f32 %v1287_v34  ;;  %v1351_v39 = vadd.f32 %v1321_v5, %v2658_v1 }
 0x43c   : > { %v2153_v0 = vpop.eup %2152  ;;  %v1350_v44 = vadd.f32 %v1319_v8, %v2652_v56 }
 0x43d   : > { %v1323_v6 = vmul.f32 0.6931472, %v2153_v0  ;;  %v1625_v1 = vsub.f32 %v1351_v39, %v2818_v29 }
 0x43e   : > { %v1624_v52 = vsub.f32 %v1350_v44, %v2822_v18  ;;  %v1550_v18 = vadd.s32 56, %v2476_v20  ;;  %v1570_v44 = vadd.s32 %v2827_v22, %v1553_v9 }
 0x43f   : > { %v1352_v59 = vadd.f32 %v1323_v6, %v2664_v7  ;;  %v1877_v7 = vsel %vm1578_vm2, 1.0, %v2190_v3  ;;  %v1641_v27 = vmul.f32 %v1876_v30, %v1625_v1 }
 0x440   : > { %v2155_v14 = vpop.eup %2154  ;;  %v1640_v33 = vmul.f32 %v1875_v23, %v1624_v52  ;;  %v1554_v52 = vadd.s32 88, %v2476_v20  ;;  %vm1586_vm10 = vcmp.lt.s32.totalorder %v1570_v44, 200 }
 0x441   : > { %v1325_v40 = vmul.f32 0.6931472, %v2155_v14  ;;  %v1626_v45 = vsub.f32 %v1352_v59, %v2820_v17  ;;  %v1878_v17 = vsel %vm1579_vm3, 1.0, %v2190_v3  ;;  %v1658_v63 = vsel %vm1656_vm6, %v1641_v27, 0.0 }
 0x442   : > { %v1293_v49 = vpop.xlane.xlu0 %1292  ;;  %v1555_v14 = vadd.s32 96, %v2476_v20  ;;  %v1657_v28 = vsel %vm1656_vm6, %v1640_v33, 0.0 }
 0x443   : > { %v1353_v56 = vadd.f32 %v1325_v40, %v2670_v19  ;;  %v1551_v19 = vadd.s32 64, %v2476_v20  ;;  %v1642_v34 = vmul.f32 %v1877_v7, %v1626_v45 }
 0x445   : > { %v1627_v10 = vsub.f32 %v1353_v56, %v2824_v41  ;;  %v1568_v62 = vadd.s32 %v2827_v22, %v1551_v19  ;;  %v1660_v35 = vsel %vm1656_vm6, %v1642_v34, 0.0  ;;  %v1571_v34 = vadd.s32 %v2827_v22, %v1554_v52 }
 0x447   : > { %v1643_v0 = vmul.f32 %v1878_v17, %v1627_v10  ;;  %vm1584_vm8 = vcmp.lt.s32.totalorder %v1568_v62, 200  ;;  %vm1587_vm13 = vcmp.lt.s32.totalorder %v1571_v34, 200 }
 0x448   : > { %v2157_v15 = vpop.eup %2156 }
 0x449   : > { %v1329_v29 = vmul.f32 0.6931472, %v2157_v15  ;;  %v1662_v60 = vsel %vm1656_vm6, %v1643_v0, 0.0 }
 0x44a   : > { %v1299_v12 = vpop.xlane.xlu0 %1298 }
 0x452   : > { %v1305_v4 = vpop.xlane.xlu0 %1304 }
 0x45f   : > { %v1284_v58 = vpop.xlane.xlu1 %1283 }
 0x460   : > { %2158 = vlog2.f32 %v1284_v58  ;;  %v1879_v58 = vsel %vm1580_vm4, 1.0, %v2190_v3 }
 0x463   : > { %v1290_v50 = vpop.xlane.xlu1 %1289 }
 0x464   : > { %2160 = vlog2.f32 %v1290_v50  ;;  %v1567_v50 = vadd.s32 %v2827_v22, %v1550_v18  ;;  %v2954_v18 = vld [vmem:[#allocation5_spill] sm:$0xff] }
 0x466   : > { %vm1583_vm9 = vcmp.lt.s32.totalorder %v1567_v50, 200 }
 0x467   : > { %v1296_v26 = vpop.xlane.xlu1 %1295  ;;  %v1882_v19 = vsel %vm1583_vm9, 1.0, %v2190_v3 }
 0x468   : > { %2162 = vlog2.f32 %v1296_v26 }
 0x469   : > { %2164 = vlog2.f32 %v1293_v49  ;;  %v1355_v49 = vadd.f32 %v1329_v29, %v2676_v38 }
 0x46b   : > { %v1302_v53 = vpop.xlane.xlu1 %1301 }
 0x46c   : > { %2166 = vlog2.f32 %v1302_v53 }
 0x46d   : > { %v2159_v21 = vpop.eup %2158  ;;  %2168 = vlog2.f32 %v1299_v12  ;;  %v1659_v12 = vadd.f32 %v1658_v63, %v1657_v28 }
 0x46e   : > { %v1327_v11 = vmul.f32 0.6931472, %v2159_v21  ;;  %v1883_v21 = vsel %vm1584_vm8, 1.0, %v2190_v3 }
 0x46f   : > { %v1308_v57 = vpop.xlane.xlu0 %1307  ;;  %v1508_v54 = vpop.xlane.xlu1 %1507  ;;  %v1661_v59 = vadd.f32 %v1660_v35, %v1659_v12 }
 0x470   : > { %v1354_v42 = vadd.f32 %v1327_v11, %v2702_v31  ;;  %2170 = vlog2.f32 %v1308_v57  ;;  %v1880_v31 = vsel %vm1581_vm5, 1.0, %v2190_v3 }
 0x471   : > { %2172 = vlog2.f32 %v1305_v4  ;;  %v2161_v61 = vpop.eup %2160  ;;  %v1572_v4 = vadd.s32 %v2827_v22, %v1555_v14  ;;  %v1663_v53 = vadd.f32 %v1662_v60, %v1661_v59  ;;  %v2955_v14 = vld [vmem:[#allocation2_spill] sm:$0xff] }
 0x472   : > { %v1628_v32 = vsub.f32 %v1354_v42, %v1508_v54  ;;  %v1331_v41 = vmul.f32 0.6931472, %v2161_v61 }
 0x473   : > { %v1311_v24 = vpop.xlane.xlu0 %1310  ;;  %v1511_v5 = vpop.xlane.xlu1 %1510  ;;  %vm1588_vm11 = vcmp.lt.s32.totalorder %v1572_v4, 200 }
 0x474   : > { %2174 = vlog2.f32 %v1311_v24  ;;  %v1644_v8 = vmul.f32 %v1879_v58, %v1628_v32  ;;  %v1629_v6 = vsub.f32 %v1355_v49, %v1511_v5  ;;  %v1356_v38 = vadd.f32 %v1331_v41, %v2708_v37 }
 0x475   : > { %v2163_v16 = vpop.eup %2162  ;;  %v1556_v58 = vadd.s32 104, %v2476_v20  ;;  %v1887_v5 = vsel %vm1588_vm11, 1.0, %v2190_v3 }
 0x476   : > { %v2165_v39 = vpop.eup %2164  ;;  %v1335_v26 = vmul.f32 0.6931472, %v2163_v16  ;;  %v1664_v15 = vsel %vm1656_vm6, %v1644_v8, 0.0  ;;  %v1645_v23 = vmul.f32 %v1880_v31, %v1629_v6  ;;  %v1885_v31 = vsel %vm1586_vm10, 1.0, %v2190_v3 }
 0x477   : > { %v1314_v40 = vpop.xlane.xlu0 %1313  ;;  %v1514_v13 = vpop.xlane.xlu1 %1513  ;;  %v1333_v37 = vmul.f32 0.6931472, %v2165_v39  ;;  %v1665_v55 = vadd.f32 %v1664_v15, %v1663_v53  ;;  %v1884_v16 = vsel %vm1585_vm12, 1.0, %v2190_v3  ;;  %v1573_v6 = vadd.s32 %v2827_v22, %v1556_v58  ;;  %v2958_v53 = vld [vmem:[#allocation7_spill] sm:$0xff] }
 0x478   : > { %2176 = vlog2.f32 %v1314_v40  ;;  %v1630_v1 = vsub.f32 %v1356_v38, %v1514_v13  ;;  %v1358_v11 = vadd.f32 %v1335_v26, %v2714_v25  ;;  %v1666_v42 = vsel %vm1656_vm6, %v1645_v23, 0.0  ;;  %v2956_v38 = vld [vmem:[#allocation6_spill] sm:$0xff] }
 0x479   : > { %v2167_v47 = vpop.eup %2166  ;;  %v1357_v17 = vadd.f32 %v1333_v37, %v2682_v2  ;;  %v1557_v25 = vadd.s32 112, %v2476_v20  ;;  %v1667_v0 = vadd.f32 %v1666_v42, %v1665_v55  ;;  %v1558_v26 = vadd.s32 120, %v2476_v20  ;;  %v2959_v55 = vld [vmem:[#allocation4_spill] sm:$0xff] }
 0x47a   : > { %v2169_v30 = vpop.eup %2168  ;;  %v1339_v56 = vmul.f32 0.6931472, %v2167_v47  ;;  %v1646_v45 = vmul.f32 %v1881_v43, %v1630_v1  ;;  %v2957_v1 = vld [vmem:[#allocation3_spill] sm:$0xff]  ;;  %vm1589_vm15 = vcmp.lt.s32.totalorder %v1573_v6, 200 }
 0x47b   : > { %v1317_v7 = vpop.xlane.xlu0 %1316  ;;  %v1520_v27 = vpop.xlane.xlu1 %1519  ;;  %v1337_v29 = vmul.f32 0.6931472, %v2169_v30  ;;  %v1574_v35 = vadd.s32 %v2827_v22, %v1557_v25  ;;  %v1886_v30 = vsel %vm1587_vm13, 1.0, %v2190_v3  ;;  %v1575_v52 = vadd.s32 %v2827_v22, %v1558_v26 }
 0x47c   : > { %2178 = vlog2.f32 %v1317_v7  ;;  %v1632_v54 = vsub.f32 %v1358_v11, %v1520_v27  ;;  %v1360_v61 = vadd.f32 %v1339_v56, %v2954_v18  ;;  %v1668_v41 = vsel %vm1656_vm6, %v1646_v45, 0.0 }
 0x47d   : > { %v2171_v57 = vpop.eup %2170  ;;  %v1359_v48 = vadd.f32 %v1337_v29, %v2955_v14  ;;  %v1669_v28 = vadd.f32 %v1668_v41, %v1667_v0  ;;  %vm1590_vm14 = vcmp.lt.s32.totalorder %v1574_v35, 200  ;;  %vm1591_vm0 = vcmp.lt.s32.totalorder %v1575_v52, 200 }
 0x47e   : > { %v2173_v10 = vpop.eup %2172  ;;  %v1343_v32 = vmul.f32 0.6931472, %v2171_v57  ;;  %v1648_v9 = vmul.f32 %v1883_v21, %v1632_v54 }
 0x47f   : > { %v1517_v33 = vpop.xlane.xlu0 %1516  ;;  %v1526_v24 = vpop.xlane.xlu1 %1525  ;;  %v1341_v63 = vmul.f32 0.6931472, %v2173_v10 }
 0x480   : > { %v1631_v62 = vsub.f32 %v1357_v17, %v1517_v33  ;;  %v1634_v2 = vsub.f32 %v1360_v61, %v1526_v24  ;;  %v1362_v43 = vadd.f32 %v1343_v32, %v2956_v38  ;;  %v1672_v47 = vsel %vm1656_vm6, %v1648_v9, 0.0 }
 0x481   : > { %v2175_v49 = vpop.eup %2174  ;;  %v1361_v4 = vadd.f32 %v1341_v63, %v2957_v1  ;;  %v1889_v17 = vsel %vm1590_vm14, 1.0, %v2190_v3  ;;  %v1888_v61 = vsel %vm1589_vm15, 1.0, %v2190_v3  ;;  %v1890_v24 = vsel %vm1591_vm0, 1.0, %v2190_v3 }
 0x482   : > { %v1647_v50 = vmul.f32 %v1882_v19, %v1631_v62  ;;  %v1345_v13 = vmul.f32 0.6931472, %v2175_v49  ;;  %v1650_v44 = vmul.f32 %v1885_v31, %v1634_v2 }
 0x483   : > { %v1523_v8 = vpop.xlane.xlu0 %1522  ;;  %v1532_v12 = vpop.xlane.xlu1 %1531 }
 0x484   : > { %v1670_v39 = vsel %vm1656_vm6, %v1647_v50, 0.0  ;;  %v1633_v40 = vsub.f32 %v1359_v48, %v1523_v8  ;;  %v1636_v37 = vsub.f32 %v1362_v43, %v1532_v12  ;;  %v1676_v11 = vsel %vm1656_vm6, %v1650_v44, 0.0 }
 0x485   : > { %v2177_v60 = vpop.eup %2176  ;;  %v1671_v59 = vadd.f32 %v1670_v39, %v1669_v28  ;;  %v1363_v19 = vadd.f32 %v1345_v13, %v2959_v55 }
 0x486   : > { %v1347_v46 = vmul.f32 0.6931472, %v2177_v60  ;;  %v1649_v15 = vmul.f32 %v1884_v16, %v1633_v40  ;;  %v1652_v29 = vmul.f32 %v1887_v5, %v1636_v37 }
 0x487   : > { %v1673_v23 = vadd.f32 %v1672_v47, %v1671_v59  ;;  %v1529_v56 = vpop.xlane.xlu0 %1528  ;;  %v1538_v57 = vpop.xlane.xlu1 %1537 }
 0x488   : > { %v1674_v20 = vsel %vm1656_vm6, %v1649_v15, 0.0  ;;  %v1364_v21 = vadd.f32 %v1347_v46, %v2958_v53  ;;  %v1635_v7 = vsub.f32 %v1361_v4, %v1529_v56  ;;  %v1680_v58 = vsel %vm1656_vm6, %v1652_v29, 0.0 }
 0x489   : > { %v2179_v45 = vpop.eup %2178  ;;  %v1675_v27 = vadd.f32 %v1674_v20, %v1673_v23 }
 0x48a   : > { %v1349_v10 = vmul.f32 0.6931472, %v2179_v45  ;;  %v1638_v42 = vsub.f32 %v1364_v21, %v1538_v57  ;;  %v1651_v54 = vmul.f32 %v1886_v30, %v1635_v7 }
 0x48b   : > { %v1677_v18 = vadd.f32 %v1676_v11, %v1675_v27  ;;  %v1535_v33 = vpop.xlane.xlu0 %1534 }
 0x48c   : > { %v1678_v22 = vsel %vm1656_vm6, %v1651_v54, 0.0  ;;  %v1637_v25 = vsub.f32 %v1363_v19, %v1535_v33  ;;  %v1654_v32 = vmul.f32 %v1889_v17, %v1638_v42  ;;  %v1365_v31 = vadd.f32 %v1349_v10, %v2738_v36 }
 0x48d   : > { %v1679_v34 = vadd.f32 %v1678_v22, %v1677_v18 }
 0x48e   : > { %v1653_v41 = vmul.f32 %v1888_v61, %v1637_v25  ;;  %v1684_v9 = vsel %vm1656_vm6, %v1654_v32, 0.0 }
 0x48f   : > { %v1541_v62 = vpop.xlane.xlu0 %1540  ;;  %v1681_v63 = vadd.f32 %v1680_v58, %v1679_v34 }
 0x490   : > { %v1682_v0 = vsel %vm1656_vm6, %v1653_v41, 0.0  ;;  %v1639_v2 = vsub.f32 %v1365_v31, %v1541_v62 }
 0x491   : > { %v1683_v5 = vadd.f32 %v1682_v0, %v1681_v63 }
 0x492   : > { %v1655_v49 = vmul.f32 %v1890_v24, %v1639_v2 }
 0x493   : > { %v1685_v50 = vadd.f32 %v1684_v9, %v1683_v5 }
 0x494   : > { %v1686_v14 = vsel %vm1656_vm6, %v1655_v49, 0.0 }
 0x495   : > { %v1687_v48 = vadd.f32 %v1686_v14, %v1685_v50 }
 0x497   : > { %1688 = vadd.xlane.f32.xlu1 %v1687_v48 }
 0x520   : > { %v1689_v16 = vpop.xlane.xlu1 %1688 }
 0x521   : > { %v1690_v36 = vrot.slane %v1689_v16, 4 }
 0x523   : > { %v1691_v28 = vadd.f32 %v1690_v36, %v1689_v16 }
 0x525   : > { %v1692_v3 = vrot.slane %v1691_v28, 2 }
 0x527   : > { %v1693_v8 = vadd.f32 %v1692_v3, %v1691_v28 }
 0x529   : > { %v1694_v35 = vrot.slane %v1693_v8, 1 }
 0x52b   : > { %v1695_v6 = vadd.f32 %v1694_v35, %v1693_v8 }
 0x52d   : > { %2021 = vpush %v1695_v6 }
 0x55e   : > { %s2022_s19 = spop %2021 }
 0x55f   : > { %v1698_v39 = vstv %s2022_s19 }
 0x560   : > { %v1699_v12 = vsel %vm1697_vm1, %v1698_v39, 0.0 }
 0x561   : > { %1700 = vst [vmem:[%s298_s18] sm:$0x1] %v1699_v12 }
 0x562 PF: > { %s17_s24 = sadd.s32 1, %s2186_s24  }
 0x563   : > { %p14_p5 = scmp.ge.s32.totalorder %s17_s24, 4  }
 0x565   :  { %16 = sbr.rel (!%p14_p5) target bundleno = 1 (0x1), region = 81 }

</bundles_post_ra>
